<compile_context>
chip_gen: v7x
topology: tpu7x:2x2x1
jax: 0.10.0
libtpu: 0.0.40
codegen_flags: <defaults>
</compile_context>

<pallas_src>
import functools

import jax
import jax.numpy as jnp
from jax.experimental import pallas as pl
from jax.experimental.pallas import tpu as pltpu

LANE = 128  # TPU lane width; hidden/output feature dims padded to this.


def _round_up(n, m):
    return ((n + m - 1) // m) * m


def _device_kind():
    try:
        return jax.devices()[0].device_kind.lower()
    except Exception:
        return ""


def mlp_kernel(x_ref,
               w1_ref, b1_ref,
               w2_ref, b2_ref,
               w3_ref, b3_ref,
               w4_ref, b4_ref,
               w5_ref, b5_ref,
               o_ref, *, relu_in_bf16):
    """Fused 5-layer MLP on one [tile_m, in_dim] batch tile.

    bf16 MXU operands, f32 accumulation. Dropout (eval mode) is identity.
    ReLU in bf16 on chips with bf16 VALUs, f32 otherwise.
    """

    def layer(h, w_ref, b_ref):
        acc = jnp.dot(h, w_ref[...],
                      preferred_element_type=jnp.float32) + b_ref[...]
        if relu_in_bf16:
            return jnp.maximum(acc.astype(jnp.bfloat16), 0.0)
        return jnp.maximum(acc, 0.0).astype(jnp.bfloat16)

    h = x_ref[...]
    h = layer(h, w1_ref, b1_ref)      # layer_1 + relu_1 (+dropout_1: id)
    h = layer(h, w2_ref, b2_ref)      # layer_2 + relu_2 (+dropout_2: id)
    h = layer(h, w3_ref, b3_ref)      # layer_3 + relu_3 (+dropout_3: id)
    h = layer(h, w4_ref, b4_ref)      # layer_4 + relu_4 (+dropout_4: id)
    out = jnp.dot(h, w5_ref[...],
                  preferred_element_type=jnp.float32) + b5_ref[...]
    o_ref[...] = out.astype(o_ref.dtype)


def _prepare_padded_params(params):
    """Zero-pad hidden/output feature dims to multiples of 128 (lane-dense);
    layer-1's input dim stays unpadded (matches the unpadded activation x).
    Weights cast to bf16 (half the weight DMA, native MXU rate); biases f32."""
    padded = {}
    for i in range(1, 6):
        w = params[f"w{i}"]
        b = params[f"b{i}"]
        in_p = w.shape[0] if i == 1 else _round_up(w.shape[0], LANE)
        out_p = _round_up(w.shape[1], LANE)
        w_p = jnp.zeros((in_p, out_p), jnp.float32)
        w_p = w_p.at[:w.shape[0], :w.shape[1]].set(w)
        b_p = jnp.zeros((1, out_p), jnp.float32)
        b_p = b_p.at[:, :b.shape[1]].set(b)
        padded[f"w{i}"] = w_p.astype(jnp.bfloat16)
        padded[f"b{i}"] = b_p
    return padded


def make_mlp_forward(params, *, tile_m=None, out_dtype=jnp.bfloat16):
    """Builds a jitted forward(x) closure.

    params: dict of w{i}: [in, out] f32 (transposed vs nn.Linear), b{i}: [1, out].
    Padded bf16 params are computed once here and stay device-resident.
    """
    p = _prepare_padded_params(params)            # once, not per call
    num_classes = params["w5"].shape[1]
    in_dim = params["w1"].shape[0]
    out_dim_p = p["w5"].shape[1]

    kind = _device_kind()
    is_v7 = "v7" in kind
    is_v5 = "v5" in kind
    relu_in_bf16 = not is_v5                      # v5e has no bf16 VALU
    if tile_m is None:
        # v7x: keep grid >= 2 at batch 256 so both TensorCores get work.
        # v5e/v6e: single TC -> bigger tile = fewer serial grid steps.
        tile_m_target = 128 if is_v7 else 256
    else:
        tile_m_target = tile_m

    kernel = functools.partial(mlp_kernel, relu_in_bf16=relu_in_bf16)

    param_order = ("w1", "b1", "w2", "b2", "w3", "b3", "w4", "b4", "w5", "b5")
    param_args = tuple(p[k] for k in param_order)

    @jax.jit
    def forward(x):
        B = x.shape[0]
        tm = min(tile_m_target, _round_up(B, LANE))
        B_p = _round_up(B, tm)

        x_b = x.astype(jnp.bfloat16)
        if B_p != B:  # only pad the batch dim, and only when needed
            x_b = jnp.zeros((B_p, in_dim), jnp.bfloat16).at[:B, :].set(x_b)

        grid = (B_p // tm,)
        in_specs = [pl.BlockSpec((tm, in_dim), lambda i: (i, 0))]
        for k in param_order:
            # Pinned: constant block index -> one DMA, resident across tiles.
            in_specs.append(pl.BlockSpec(p[k].shape, lambda i: (0, 0)))
        out_specs = pl.BlockSpec((tm, out_dim_p), lambda i: (i, 0))

        fn = pl.pallas_call(
            kernel,
            out_shape=jax.ShapeDtypeStruct((B_p, out_dim_p), out_dtype),
            grid_spec=pltpu.PrefetchScalarGridSpec(
                num_scalar_prefetch=0,
                grid=grid,
                in_specs=in_specs,
                out_specs=out_specs,
            ),
            compiler_params=pltpu.CompilerParams(
                dimension_semantics=("parallel",)),
        )
        out_p = fn(x_b, *param_args)
        return out_p[:B, :num_classes]

    return forward


def init_params(key, input_dim, num_classes):
    """Deterministic init mimicking nn.Linear default (uniform +-1/sqrt(fan_in)).
    Weights stored transposed relative to PyTorch: [in, out]."""
    dims = [(input_dim, 128), (128, 256), (256, 128), (128, 64),
            (64, num_classes)]
    params = {}
    for idx, (fan_in, fan_out) in enumerate(dims, start=1):
        key, kw, kb = jax.random.split(key, 3)
        bound = 1.0 / jnp.sqrt(jnp.float32(fan_in))
        params[f"w{idx}"] = jax.random.uniform(
            kw, (fan_in, fan_out), jnp.float32, -bound, bound)
        params[f"b{idx}"] = jax.random.uniform(
            kb, (1, fan_out), jnp.float32, -bound, bound)
    return params


def mlp_reference(x, params):
    """Pure-JAX reference with matching numerics: bf16 operands, f32
    accumulation (dropout in eval mode = identity)."""
    h = x.astype(jnp.bfloat16)
    for i in range(1, 5):
        a = jnp.dot(h, params[f"w{i}"].astype(jnp.bfloat16),
                    preferred_element_type=jnp.float32) + params[f"b{i}"]
        h = jnp.maximum(a, 0.0).astype(jnp.bfloat16)
    return jnp.dot(h, params["w5"].astype(jnp.bfloat16),
                   preferred_element_type=jnp.float32) + params["b5"]


if __name__ == "__main__":
    key = jax.random.PRNGKey(0)
    input_dim = 32
    num_classes = 10
    batch = 256  # v7x: 2x128-row tiles (one per TC); v5e/v6e: single 256-row tile

    kp, kx = jax.random.split(key)
    params = init_params(kp, input_dim, num_classes)
    x = jax.random.normal(kx, (batch, input_dim), jnp.float32)

    forward = make_mlp_forward(params)
    out = forward(x)
    out = jax.block_until_ready(out)

    ref = mlp_reference(x, params)
    assert out.shape == (batch, num_classes)
    # bf16 operands + bf16 output store -> bf16-level tolerance vs matching ref.
    assert jnp.allclose(out.astype(jnp.float32), ref,
                        atol=2.5e-2, rtol=2.5e-2), "mismatch vs reference"

    print("KERNEL_OK")
</pallas_src>

<mosaic_0001>
module attributes {stable_mosaic.version = 11 : i64} {
  func.func @mlp_kernel(%arg0: i32, %arg1: memref<256x32xbf16, #tpu.memory_space<vmem>>, %arg2: memref<32x128xbf16, #tpu.memory_space<vmem>>, %arg3: memref<1x128xf32, #tpu.memory_space<vmem>>, %arg4: memref<128x256xbf16, #tpu.memory_space<vmem>>, %arg5: memref<1x256xf32, #tpu.memory_space<vmem>>, %arg6: memref<256x128xbf16, #tpu.memory_space<vmem>>, %arg7: memref<1x128xf32, #tpu.memory_space<vmem>>, %arg8: memref<128x128xbf16, #tpu.memory_space<vmem>>, %arg9: memref<1x128xf32, #tpu.memory_space<vmem>>, %arg10: memref<128x128xbf16, #tpu.memory_space<vmem>>, %arg11: memref<1x128xf32, #tpu.memory_space<vmem>>, %arg12: memref<256x128xbf16, #tpu.memory_space<vmem>>) attributes {dimension_semantics = [#tpu.dimension_semantics<parallel>], iteration_bounds = array<i64: 1>, scalar_prefetch = 0 : i64, scratch_operands = 0 : i64, tpu.core_type = #tpu.core_type<tc>, window_params = [{transform_indices = @transform_0, window_bounds = array<i64: 256, 32>}, {pipeline_mode = #tpu.pipeline_mode<synchronous>, transform_indices = @transform_1, window_bounds = array<i64: 32, 128>}, {pipeline_mode = #tpu.pipeline_mode<synchronous>, transform_indices = @transform_2, window_bounds = array<i64: 1, 128>}, {pipeline_mode = #tpu.pipeline_mode<synchronous>, transform_indices = @transform_3, window_bounds = array<i64: 128, 256>}, {pipeline_mode = #tpu.pipeline_mode<synchronous>, transform_indices = @transform_4, window_bounds = array<i64: 1, 256>}, {pipeline_mode = #tpu.pipeline_mode<synchronous>, transform_indices = @transform_5, window_bounds = array<i64: 256, 128>}, {pipeline_mode = #tpu.pipeline_mode<synchronous>, transform_indices = @transform_6, window_bounds = array<i64: 1, 128>}, {pipeline_mode = #tpu.pipeline_mode<synchronous>, transform_indices = @transform_7, window_bounds = array<i64: 128, 128>}, {pipeline_mode = #tpu.pipeline_mode<synchronous>, transform_indices = @transform_8, window_bounds = array<i64: 1, 128>}, {pipeline_mode = #tpu.pipeline_mode<synchronous>, transform_indices = @transform_9, window_bounds = array<i64: 128, 128>}, {pipeline_mode = #tpu.pipeline_mode<synchronous>, transform_indices = @transform_10, window_bounds = array<i64: 1, 128>}, {transform_indices = @transform_11, window_bounds = array<i64: 256, 128>}]} {
    %c0 = arith.constant 0 : index
    %c0_0 = arith.constant 0 : index
    %0 = vector.load %arg1[%c0, %c0_0] : memref<256x32xbf16, #tpu.memory_space<vmem>>, vector<256x32xbf16>
    %c0_1 = arith.constant 0 : index
    %c0_2 = arith.constant 0 : index
    %1 = vector.load %arg2[%c0_1, %c0_2] : memref<32x128xbf16, #tpu.memory_space<vmem>>, vector<32x128xbf16>
    %cst = arith.constant dense<0.000000e+00> : vector<256x128xf32>
    %2 = tpu.matmul %0, %1, %cst {dimension_numbers = #tpu.dot_dimension_numbers<[1], [0], [0], [1], [0, 0, 1, 1], [], []>} : vector<256x32xbf16>, vector<32x128xbf16>, vector<256x128xf32> -> vector<256x128xf32>
    %c0_3 = arith.constant 0 : index
    %c0_4 = arith.constant 0 : index
    %3 = vector.load %arg3[%c0_3, %c0_4] : memref<1x128xf32, #tpu.memory_space<vmem>>, vector<1x128xf32>
    %4 = vector.broadcast %3 : vector<1x128xf32> to vector<256x128xf32>
    %5 = arith.addf %2, %4 : vector<256x128xf32>
    %6 = arith.truncf %5 : vector<256x128xf32> to vector<256x128xbf16>
    %cst_5 = arith.constant 0.000000e+00 : bf16
    %7 = vector.broadcast %cst_5 : bf16 to vector<256x128xbf16>
    %8 = arith.maximumf %6, %7 : vector<256x128xbf16>
    %c0_6 = arith.constant 0 : index
    %c0_7 = arith.constant 0 : index
    %9 = vector.load %arg4[%c0_6, %c0_7] : memref<128x256xbf16, #tpu.memory_space<vmem>>, vector<128x256xbf16>
    %cst_8 = arith.constant dense<0.000000e+00> : vector<256x256xf32>
    %10 = tpu.matmul %8, %9, %cst_8 {dimension_numbers = #tpu.dot_dimension_numbers<[1], [0], [0], [1], [0, 0, 1, 1], [], []>} : vector<256x128xbf16>, vector<128x256xbf16>, vector<256x256xf32> -> vector<256x256xf32>
    %c0_9 = arith.constant 0 : index
    %c0_10 = arith.constant 0 : index
    %11 = vector.load %arg5[%c0_9, %c0_10] : memref<1x256xf32, #tpu.memory_space<vmem>>, vector<1x256xf32>
    %12 = vector.broadcast %11 : vector<1x256xf32> to vector<256x256xf32>
    %13 = arith.addf %10, %12 : vector<256x256xf32>
    %14 = arith.truncf %13 : vector<256x256xf32> to vector<256x256xbf16>
    %cst_11 = arith.constant 0.000000e+00 : bf16
    %15 = vector.broadcast %cst_11 : bf16 to vector<256x256xbf16>
    %16 = arith.maximumf %14, %15 : vector<256x256xbf16>
    %c0_12 = arith.constant 0 : index
    %c0_13 = arith.constant 0 : index
    %17 = vector.load %arg6[%c0_12, %c0_13] : memref<256x128xbf16, #tpu.memory_space<vmem>>, vector<256x128xbf16>
    %cst_14 = arith.constant dense<0.000000e+00> : vector<256x128xf32>
    %18 = tpu.matmul %16, %17, %cst_14 {dimension_numbers = #tpu.dot_dimension_numbers<[1], [0], [0], [1], [0, 0, 1, 1], [], []>} : vector<256x256xbf16>, vector<256x128xbf16>, vector<256x128xf32> -> vector<256x128xf32>
    %c0_15 = arith.constant 0 : index
    %c0_16 = arith.constant 0 : index
    %19 = vector.load %arg7[%c0_15, %c0_16] : memref<1x128xf32, #tpu.memory_space<vmem>>, vector<1x128xf32>
    %20 = vector.broadcast %19 : vector<1x128xf32> to vector<256x128xf32>
    %21 = arith.addf %18, %20 : vector<256x128xf32>
    %22 = arith.truncf %21 : vector<256x128xf32> to vector<256x128xbf16>
    %cst_17 = arith.constant 0.000000e+00 : bf16
    %23 = vector.broadcast %cst_17 : bf16 to vector<256x128xbf16>
    %24 = arith.maximumf %22, %23 : vector<256x128xbf16>
    %c0_18 = arith.constant 0 : index
    %c0_19 = arith.constant 0 : index
    %25 = vector.load %arg8[%c0_18, %c0_19] : memref<128x128xbf16, #tpu.memory_space<vmem>>, vector<128x128xbf16>
    %cst_20 = arith.constant dense<0.000000e+00> : vector<256x128xf32>
    %26 = tpu.matmul %24, %25, %cst_20 {dimension_numbers = #tpu.dot_dimension_numbers<[1], [0], [0], [1], [0, 0, 1, 1], [], []>} : vector<256x128xbf16>, vector<128x128xbf16>, vector<256x128xf32> -> vector<256x128xf32>
    %c0_21 = arith.constant 0 : index
    %c0_22 = arith.constant 0 : index
    %27 = vector.load %arg9[%c0_21, %c0_22] : memref<1x128xf32, #tpu.memory_space<vmem>>, vector<1x128xf32>
    %28 = vector.broadcast %27 : vector<1x128xf32> to vector<256x128xf32>
    %29 = arith.addf %26, %28 : vector<256x128xf32>
    %30 = arith.truncf %29 : vector<256x128xf32> to vector<256x128xbf16>
    %cst_23 = arith.constant 0.000000e+00 : bf16
    %31 = vector.broadcast %cst_23 : bf16 to vector<256x128xbf16>
    %32 = arith.maximumf %30, %31 : vector<256x128xbf16>
    %c0_24 = arith.constant 0 : index
    %c0_25 = arith.constant 0 : index
    %33 = vector.load %arg10[%c0_24, %c0_25] : memref<128x128xbf16, #tpu.memory_space<vmem>>, vector<128x128xbf16>
    %cst_26 = arith.constant dense<0.000000e+00> : vector<256x128xf32>
    %34 = tpu.matmul %32, %33, %cst_26 {dimension_numbers = #tpu.dot_dimension_numbers<[1], [0], [0], [1], [0, 0, 1, 1], [], []>} : vector<256x128xbf16>, vector<128x128xbf16>, vector<256x128xf32> -> vector<256x128xf32>
    %c0_27 = arith.constant 0 : index
    %c0_28 = arith.constant 0 : index
    %35 = vector.load %arg11[%c0_27, %c0_28] : memref<1x128xf32, #tpu.memory_space<vmem>>, vector<1x128xf32>
    %36 = vector.broadcast %35 : vector<1x128xf32> to vector<256x128xf32>
    %37 = arith.addf %34, %36 : vector<256x128xf32>
    %38 = arith.truncf %37 : vector<256x128xf32> to vector<256x128xbf16>
    %c0_29 = arith.constant 0 : index
    %c0_30 = arith.constant 0 : index
    %39 = vector.load %arg12[%c0_29, %c0_30] : memref<256x128xbf16, #tpu.memory_space<vmem>>, vector<256x128xbf16>
    tpu.vector_store %arg12[%c0_29, %c0_30], %38 {strides = array<i32>} : memref<256x128xbf16, #tpu.memory_space<vmem>>, vector<256x128xbf16>,
    return
  }
  func.func @transform_0(%arg0: i32) -> (i32, i32) {
    %c0_i32 = arith.constant 0 : i32
    %c0_i32_0 = arith.constant 0 : i32
    return %arg0, %c0_i32 : i32, i32
  }
  func.func @transform_1(%arg0: i32) -> (i32, i32) {
    %c0_i32 = arith.constant 0 : i32
    %c0_i32_0 = arith.constant 0 : i32
    %c0_i32_1 = arith.constant 0 : i32
    return %c0_i32, %c0_i32_0 : i32, i32
  }
  func.func @transform_2(%arg0: i32) -> (i32, i32) {
    %c0_i32 = arith.constant 0 : i32
    %c0_i32_0 = arith.constant 0 : i32
    %c0_i32_1 = arith.constant 0 : i32
    return %c0_i32, %c0_i32_0 : i32, i32
  }
  func.func @transform_3(%arg0: i32) -> (i32, i32) {
    %c0_i32 = arith.constant 0 : i32
    %c0_i32_0 = arith.constant 0 : i32
    %c0_i32_1 = arith.constant 0 : i32
    return %c0_i32, %c0_i32_0 : i32, i32
  }
  func.func @transform_4(%arg0: i32) -> (i32, i32) {
    %c0_i32 = arith.constant 0 : i32
    %c0_i32_0 = arith.constant 0 : i32
    %c0_i32_1 = arith.constant 0 : i32
    return %c0_i32, %c0_i32_0 : i32, i32
  }
  func.func @transform_5(%arg0: i32) -> (i32, i32) {
    %c0_i32 = arith.constant 0 : i32
    %c0_i32_0 = arith.constant 0 : i32
    %c0_i32_1 = arith.constant 0 : i32
    return %c0_i32, %c0_i32_0 : i32, i32
  }
  func.func @transform_6(%arg0: i32) -> (i32, i32) {
    %c0_i32 = arith.constant 0 : i32
    %c0_i32_0 = arith.constant 0 : i32
    %c0_i32_1 = arith.constant 0 : i32
    return %c0_i32, %c0_i32_0 : i32, i32
  }
  func.func @transform_7(%arg0: i32) -> (i32, i32) {
    %c0_i32 = arith.constant 0 : i32
    %c0_i32_0 = arith.constant 0 : i32
    %c0_i32_1 = arith.constant 0 : i32
    return %c0_i32, %c0_i32_0 : i32, i32
  }
  func.func @transform_8(%arg0: i32) -> (i32, i32) {
    %c0_i32 = arith.constant 0 : i32
    %c0_i32_0 = arith.constant 0 : i32
    %c0_i32_1 = arith.constant 0 : i32
    return %c0_i32, %c0_i32_0 : i32, i32
  }
  func.func @transform_9(%arg0: i32) -> (i32, i32) {
    %c0_i32 = arith.constant 0 : i32
    %c0_i32_0 = arith.constant 0 : i32
    %c0_i32_1 = arith.constant 0 : i32
    return %c0_i32, %c0_i32_0 : i32, i32
  }
  func.func @transform_10(%arg0: i32) -> (i32, i32) {
    %c0_i32 = arith.constant 0 : i32
    %c0_i32_0 = arith.constant 0 : i32
    %c0_i32_1 = arith.constant 0 : i32
    return %c0_i32, %c0_i32_0 : i32, i32
  }
  func.func @transform_11(%arg0: i32) -> (i32, i32) {
    %c0_i32 = arith.constant 0 : i32
    %c0_i32_0 = arith.constant 0 : i32
    return %arg0, %c0_i32 : i32, i32
  }
}

</mosaic_0001>

<bundles_post_ra>
// kernel: forward.1
= control target key start
LH: loop header
LB: loop body
LE: loop exit
PB: predicated region body
PF: predicated region fallthrough
CT: control target
= control target key end

     0   :  { %vm174_vm0 = vcmask 261120   ;;  %v2403_v34 = vmov 0   ;;  %s3101_s1 = inlined_call_operand.vmem [shape: bf16[32,128], index: 1, kind: input, shape index: {}]   ;;  %s3102_s0 = inlined_call_operand.vmem [shape: bf16[256,32], index: 0, kind: input, shape index: {}]   ;;  %s3103_s3 = inlined_call_operand.vmem [shape: bf16[128,256], index: 3, kind: input, shape index: {}]   ;;  %s3104_s2 = inlined_call_operand.vmem [shape: f32[1,128], index: 2, kind: input, shape index: {}]   ;;  %s3105_s5 = inlined_call_operand.vmem [shape: bf16[256,128], index: 5, kind: input, shape index: {}]   ;;  %s3106_s4 = inlined_call_operand.vmem [shape: f32[1,256], index: 4, kind: input, shape index: {}]   ;;  %s3107_s7 = inlined_call_operand.vmem [shape: bf16[128,128], index: 7, kind: input, shape index: {}]   ;;  %s3108_s6 = inlined_call_operand.vmem [shape: f32[1,128], index: 6, kind: input, shape index: {}]   ;;  %s3109_s9 = inlined_call_operand.vmem [shape: bf16[128,128], index: 9, kind: input, shape index: {}]   ;;  %s3110_s8 = inlined_call_operand.vmem [shape: f32[1,128], index: 8, kind: input, shape index: {}]   ;;  %s3111_s10 = inlined_call_operand.vmem [shape: f32[1,128], index: 10, kind: input, shape index: {}]   ;;  %s3112_s11 = inlined_call_operand.vmem [shape: bf16[256,128], index: 11, kind: output, shape index: {}]  }
   0x1   :  { %v2329_v0 = vld [vmem:[%s3101_s1] sm:$0xff]   ;;  %v2330_v1 = vld [vmem:[%s3101_s1 + $0x8] sm:$0xff]   ;;  %v2333_v4 = vld [vmem:[%s3102_s0 + $0x10] sm:$0xff]  }
   0x2   :  { %2192 = vmatprep.subr.bf16.mxu0 %v2329_v0  ;;  %v2331_v2 = vld [vmem:[%s3102_s0] sm:$0xff]   ;;  %2324 = vmatprep.subr.bf16.mxu1 %v2329_v0  ;;  %v2332_v3 = vld [vmem:[%s3102_s0 + $0x8] sm:$0xff]   ;;  %v2341_v7 = vld [vmem:[%s3102_s0 + $0x50] sm:$0xff]  }
   0x3   :  { %2193 = vmatpush3.bf16.msra.mxu0 %v2329_v0  ;;  %2326 = vmatpush3.bf16.msra.mxu1 %v2329_v0  ;;  %v2339_v5 = vld [vmem:[%s3102_s0 + $0x40] sm:$0xff]   ;;  %v2340_v6 = vld [vmem:[%s3102_s0 + $0x48] sm:$0xff]   ;;  %v2334_v8 = vld [vmem:[%s3102_s0 + $0x18] sm:$0xff]  }
   0x4   :  { %2194 = vmatprep.subr.bf16.mxu0 %v2330_v1  ;;  %2196 = vmatprep.mubr.msk.bf16.mxu0 %vm174_vm0, %v2331_v2  ;;  %v2335_v9 = vld [vmem:[%s3102_s0 + $0x20] sm:$0xff]   ;;  %v2342_v10 = vld [vmem:[%s3102_s0 + $0x58] sm:$0xff]   ;;  %v2336_v15 = vld [vmem:[%s3102_s0 + $0x28] sm:$0xff]  }
   0x5   :  { %2325 = vmatprep.subr.bf16.mxu1 %v2330_v1  ;;  %2212 = vmatprep.mubr.msk.bf16.mxu1 %vm174_vm0, %v2339_v5  ;;  %v2343_v11 = vld [vmem:[%s3102_s0 + $0x60] sm:$0xff]   ;;  %v2352_v14 = vld [vmem:[%s3103_s3 + $0x14] ss:$8 sps:$4 sm:$0xff]   ;;  %v2350_v17 = vld [vmem:[%s3103_s3 + $0x10] ss:$8 sps:$4 sm:$0xff]  }
   0x6   :  { %v2347_v12 = vld [vmem:[%s3103_s3] ss:$8 sps:$4 sm:$0xff]   ;;  %v2349_v13 = vld [vmem:[%s3103_s3 + $0x4] ss:$8 sps:$4 sm:$0xff]   ;;  %v2337_v16 = vld [vmem:[%s3102_s0 + $0x30] sm:$0xff]  }
   0x7   :  { %2195 = vmatpush3.bf16.msra.mxu0 %v2330_v1  ;;  %2327 = vmatpush3.bf16.msra.mxu1 %v2330_v1  ;;  %v2355_v18 = vld [vmem:[%s3103_s3 + $0x24] ss:$8 sps:$4 sm:$0xff]   ;;  %v2345_v20 = vld [vmem:[%s3102_s0 + $0x70] sm:$0xff]   ;;  %v2353_v21 = vld [vmem:[%s3103_s3 + $0x20] ss:$8 sps:$4 sm:$0xff]  }
   0x8   :  { %524 = vmatprep.subr.bf16.mxu1 %v2349_v13  ;;  %v2344_v19 = vld [vmem:[%s3102_s0 + $0x68] sm:$0xff]   ;;  %v2358_v22 = vld [vmem:[%s3103_s3 + $0x34] ss:$8 sps:$4 sm:$0xff]   ;;  %v2356_v24 = vld [vmem:[%s3103_s3 + $0x30] ss:$8 sps:$4 sm:$0xff]  }
   0x9   :  { %v2338_v23 = vld [vmem:[%s3102_s0 + $0x38] sm:$0xff]   ;;  %v2361_v25 = vld [vmem:[%s3103_s3 + $0x44] ss:$8 sps:$4 sm:$0xff]   ;;  %v2359_v27 = vld [vmem:[%s3103_s3 + $0x40] ss:$8 sps:$4 sm:$0xff]  }
   0xa   :  { %2197 = vmatmul.mubr.msk.bf16.vlgmr.msra.gmra.mrb[0].mxu0 %vm174_vm0, %v2332_v3  ;;  %2213 = vmatmul.mubr.msk.bf16.vlgmr.msra.gmra.mrb[0].mxu1 %vm174_vm0, %v2340_v6  ;;  %v2346_v26 = vld [vmem:[%s3102_s0 + $0x78] sm:$0xff]   ;;  %v2367_v30 = vld [vmem:[%s3103_s3 + $0x64] ss:$8 sps:$4 sm:$0xff]   ;;  %v2365_v31 = vld [vmem:[%s3103_s3 + $0x60] ss:$8 sps:$4 sm:$0xff]  }
   0xb   :  { %2200 = vmatprep.mubr.msk.bf16.mxu0 %vm174_vm0, %v2333_v4  ;;  %2216 = vmatprep.mubr.msk.bf16.mxu1 %vm174_vm0, %v2341_v7  ;;  %v2364_v28 = vld [vmem:[%s3103_s3 + $0x54] ss:$8 sps:$4 sm:$0xff]   ;;  %v2362_v29 = vld [vmem:[%s3103_s3 + $0x50] ss:$8 sps:$4 sm:$0xff]   ;;  %v2586_v36 = vld [vmem:[%s3104_s2] ss:$0 sm:$0xff] }
   0xc   :  { %525 = vmatpush1.bf16.msra.mxu1 %v2347_v12  ;;  %v2370_v32 = vld [vmem:[%s3103_s3 + $0x74] ss:$8 sps:$4 sm:$0xff]   ;;  %v2368_v33 = vld [vmem:[%s3103_s3 + $0x70] ss:$8 sps:$4 sm:$0xff]   ;;  %v2371_v47 = vld [vmem:[%s3105_s5 + $0x40] sm:$0xff]  }
   0xd   :  { %526 = vmatprep.subr.bf16.mxu1 %v2352_v14  ;;  %v2372_v51 = vld [vmem:[%s3105_s5] sm:$0xff]   ;;  %2032 = vmatprep.subr.bf16.mxu0 %v2371_v47  ;;  %v2373_v55 = vld [vmem:[%s3105_s5 + $0x48] sm:$0xff]   ;;  %v2375_v61 = vld [vmem:[%s3105_s5 + $0x50] sm:$0xff]  }
   0xe   :  { %2033 = vmatpush3.bf16.msra.mxu0 %v2372_v51  ;;  %v2374_v57 = vld [vmem:[%s3105_s5 + $0x8] sm:$0xff]   ;;  %v2376_v6 = vld [vmem:[%s3105_s5 + $0x10] sm:$0xff]  }
   0xf   :  { %2034 = vmatprep.subr.bf16.mxu0 %v2373_v55 }
  0x10   :  { %527 = vmatpush1.bf16.msra.mxu1 %v2350_v17 }
  0x11   :  { %528 = vmatprep.subr.bf16.mxu1 %v2355_v18  ;;  %v2378_v18 = vld [vmem:[%s3105_s5 + $0x18] sm:$0xff]  }
  0x12   :  { %2201 = vmatmul.mubr.msk.bf16.gmra.mrb[4].mxu0 %vm174_vm0, %v2334_v8  ;;  %2217 = vmatmul.mubr.msk.bf16.gmra.mrb[4].mxu1 %vm174_vm0, %v2342_v10  ;;  %v2377_v10 = vld [vmem:[%s3105_s5 + $0x58] sm:$0xff]  }
  0x13   :  { %2204 = vmatprep.mubr.msk.bf16.mxu0 %vm174_vm0, %v2335_v9  ;;  %2220 = vmatprep.mubr.msk.bf16.mxu1 %vm174_vm0, %v2343_v11 }
  0x14   :  { %529 = vmatpush1.bf16.msra.mxu1 %v2353_v21  ;;  %2035 = vmatpush3.bf16.msra.mxu0 %v2374_v57 }
  0x15   :  { %530 = vmatprep.subr.bf16.mxu1 %v2358_v22  ;;  %2036 = vmatprep.subr.bf16.mxu0 %v2375_v61  ;;  %v2379_v22 = vld [vmem:[%s3105_s5 + $0x60] sm:$0xff]  }
  0x18   :  { %531 = vmatpush1.bf16.msra.mxu1 %v2356_v24  ;;  %2037 = vmatpush3.bf16.msra.mxu0 %v2376_v6 }
  0x19   :  { %532 = vmatprep.subr.bf16.mxu1 %v2361_v25  ;;  %2038 = vmatprep.subr.bf16.mxu0 %v2377_v10 }
  0x1a   :  { %2205 = vmatmul.mubr.msk.bf16.gmra.mrb[8].mxu0 %vm174_vm0, %v2336_v15  ;;  %2221 = vmatmul.mubr.msk.bf16.gmra.mrb[8].mxu1 %vm174_vm0, %v2344_v19 }
  0x1b   :  { %2208 = vmatprep.mubr.msk.bf16.mxu0 %vm174_vm0, %v2337_v16  ;;  %2224 = vmatprep.mubr.msk.bf16.mxu1 %vm174_vm0, %v2345_v20 }
  0x1c   :  { %533 = vmatpush1.bf16.msra.mxu1 %v2359_v27  ;;  %2039 = vmatpush3.bf16.msra.mxu0 %v2378_v18 }
  0x1d   :  { %534 = vmatprep.subr.bf16.mxu1 %v2364_v28  ;;  %v2380_v28 = vld [vmem:[%s3105_s5 + $0x20] sm:$0xff]   ;;  %2040 = vmatprep.subr.bf16.mxu0 %v2379_v22 }
  0x20   :  { %535 = vmatpush1.bf16.msra.mxu1 %v2362_v29  ;;  %2041 = vmatpush3.bf16.msra.mxu0 %v2380_v28 }
  0x21   :  { %536 = vmatprep.subr.bf16.mxu1 %v2367_v30 }
  0x22   :  { %2209 = vmatmul.mubr.msk.bf16.gmra.mrb[12].mxu0 %vm174_vm0, %v2338_v23  ;;  %2225 = vmatmul.mubr.msk.bf16.gmra.mrb[12].mxu1 %vm174_vm0, %v2346_v26 }
  0x23   :  { %556 = vmatprep.mubr.bf16.mxu1 %v2403_v34 }
  0x24   :  { %537 = vmatpush1.bf16.msra.mxu1 %v2365_v31 }
  0x25   :  { %538 = vmatprep.subr.bf16.mxu1 %v2370_v32 }
  0x28   :  { %539 = vmatpush1.bf16.msra.mxu1 %v2368_v33 }
  0xdd   :  { %v2198_v35 = vpop.f32.mrb[0].mxu0  ;;  %v2214_v42 = vpop.f32.mrb[0].mxu1 }
  0xde   :  { %v257_v37 = vpop.f32.mrb[1].mxu0  ;;  %v266_v39 = vadd.f32 %v2198_v35, %v2586_v36  ;;  %v2593_v45 = vadd.f32 %v2214_v42, %v2586_v36  ;;  %v321_v46 = vpop.f32.mrb[1].mxu1 }
  0xdf   :  { %v2199_v38 = vpop.f32.mrb[2].mxu0  ;;  %v258_v43 = vadd.f32 %v2586_v36, %v257_v37  ;;  %v2599_v49 = vadd.f32 %v2586_v36, %v321_v46  ;;  %v2215_v50 = vpop.f32.mrb[2].mxu1  ;;  %v2381_v37 = vld [vmem:[%s3105_s5 + $0x68] sm:$0xff]  }
  0xe0   :  { %v269_v40 = vadd.f32 %v2199_v38, %v2586_v36  ;;  %v260_v41 = vpop.f32.mrb[3].mxu0  ;;  %v2605_v53 = vadd.f32 %v2215_v50, %v2586_v36  ;;  %v324_v54 = vpop.f32.mrb[3].mxu1  ;;  %v2382_v46 = vld [vmem:[%s3105_s5 + $0x28] sm:$0xff]   ;;  %2042 = vmatprep.subr.bf16.mxu0 %v2381_v37 }
  0xe1   :  { %v261_v44 = vadd.f32 %v2586_v36, %v260_v41  ;;  %v2611_v56 = vadd.f32 %v2586_v36, %v324_v54  ;;  %2043 = vmatpush3.bf16.msra.mxu0 %v2382_v46 }
  0xe2   :  { %v385_v48 = vpack.c.bf16 %v269_v40, %v266_v39  ;;  %v393_v60 = vpack.c.bf16 %v2605_v53, %v2593_v45  ;;  %v2384_v45 = vld [vmem:[%s3105_s5 + $0x30] sm:$0xff]  }
  0xe3   :  { %v384_v52 = vpack.c.bf16 %v261_v44, %v258_v43  ;;  %v392_v0 = vpack.c.bf16 %v2611_v56, %v2599_v49  ;;  %v2383_v49 = vld [vmem:[%s3105_s5 + $0x70] sm:$0xff]   ;;  %v2385_v56 = vld [vmem:[%s3105_s5 + $0x78] sm:$0xff]  }
  0xe4   :  { %v401_v19 = vmax.bf16 %v2403_v34, %v385_v48  ;;  %2044 = vmatprep.subr.bf16.mxu0 %v2383_v49 }
  0xe5   :  { %v400_v58 = vmax.bf16 %v2403_v34, %v384_v52  ;;  %v2202_v59 = vpop.f32.mrb[4].mxu0  ;;  %v2218_v5 = vpop.f32.mrb[4].mxu1  ;;  %2045 = vmatpush3.bf16.msra.mxu0 %v2384_v45 }
  0xe6   :  { %v2623_v62 = vadd.f32 %v2202_v59, %v2586_v36  ;;  %v273_v63 = vpop.f32.mrb[5].mxu0  ;;  %v2637_v8 = vadd.f32 %v2218_v5, %v2586_v36  ;;  %v337_v9 = vpop.f32.mrb[5].mxu1  ;;  %2046 = vmatprep.subr.bf16.mxu0 %v2385_v56 }
  0xe7   :  { %557 = vmatmul.mubr.bf16.vlgmr.msra.gmra.mrb[16].mxu1 %v400_v58  ;;  %v274_v1 = vadd.f32 %v2586_v36, %v273_v63  ;;  %v2203_v2 = vpop.f32.mrb[6].mxu0  ;;  %v2645_v12 = vadd.f32 %v2586_v36, %v337_v9  ;;  %v2219_v13 = vpop.f32.mrb[6].mxu1 }
  0xe8   :  { %v2629_v3 = vadd.f32 %v2203_v2, %v2586_v36  ;;  %v276_v4 = vpop.f32.mrb[7].mxu0  ;;  %566 = vmatprep.mubr.bf16.mxu1 %v2403_v34  ;;  %v2648_v15 = vadd.f32 %v2219_v13, %v2586_v36  ;;  %v340_v16 = vpop.f32.mrb[7].mxu1 }
  0xe9   :  { %v277_v7 = vadd.f32 %v2586_v36, %v276_v4  ;;  %v2651_v17 = vadd.f32 %v2586_v36, %v340_v16 }
  0xea   :  { %v387_v11 = vpack.c.bf16 %v2629_v3, %v2623_v62  ;;  %v395_v21 = vpack.c.bf16 %v2648_v15, %v2637_v8  ;;  %v408_v3 = vmax.bf16 %v2403_v34, %v392_v0 }
  0xeb   :  { %v386_v14 = vpack.c.bf16 %v277_v7, %v274_v1  ;;  %v394_v25 = vpack.c.bf16 %v2651_v17, %v2645_v12  ;;  %v434_v17 = vlaneseq }
  0xec   :  { %v411_v53 = vmax.bf16 %v2403_v34, %v395_v21 }
  0xed   :  { %v2206_v20 = vpop.f32.mrb[8].mxu0  ;;  %v2222_v31 = vpop.f32.mrb[8].mxu1  ;;  %v402_v47 = vmax.bf16 %v2403_v34, %v386_v14  ;;  %v403_v14 = vmax.bf16 %v2403_v34, %v387_v11  ;;  %v409_v11 = vmax.bf16 %v2403_v34, %v393_v60  ;;  %v410_v22 = vmax.bf16 %v2403_v34, %v394_v25  ;;  %v2386_v60 = vld [vmem:[%s3105_s5 + $0x38] sm:$0xff]  }
  0xee   :  { %v298_v23 = vadd.f32 %v2206_v20, %v2586_v36  ;;  %v289_v24 = vpop.f32.mrb[9].mxu0  ;;  %v2673_v33 = vadd.f32 %v2222_v31, %v2586_v36  ;;  %v353_v35 = vpop.f32.mrb[9].mxu1  ;;  %2047 = vmatpush3.bf16.msra.mxu0 %v2386_v60  ;;  %v435_v21 = vshrl.u32 %v434_v17, 7 }
  0xef   :  { %567 = vmatmul.mubr.bf16.gmra.mrb[20].mxu1 %v401_v19  ;;  %v290_v26 = vadd.f32 %v2586_v36, %v289_v24  ;;  %v2207_v27 = vpop.f32.mrb[10].mxu0  ;;  %v2679_v39 = vadd.f32 %v2586_v36, %v353_v35  ;;  %v2223_v40 = vpop.f32.mrb[10].mxu1  ;;  %v432_v24 = vld [vmem:[%s3106_s4] sm:$0x3] }
  0xf0   :  { %576 = vmatprep.mubr.bf16.mxu1 %v2403_v34  ;;  %v301_v29 = vadd.f32 %v2207_v27, %v2586_v36  ;;  %v292_v30 = vpop.f32.mrb[11].mxu0  ;;  %v2682_v42 = vadd.f32 %v2223_v40, %v2586_v36  ;;  %v356_v43 = vpop.f32.mrb[11].mxu1  ;;  %v440_v25 = vsub.s32 1, %v435_v21  ;;  %v2388_v40 = vld [vmem:[%s3107_s7 + $0x8] sm:$0xff]  }
  0xf1   :  { %v293_v32 = vadd.f32 %v2586_v36, %v292_v30  ;;  %v2685_v44 = vadd.f32 %v2586_v36, %v356_v43 }
  0xf2   :  { %v389_v38 = vpack.c.bf16 %v301_v29, %v298_v23  ;;  %v397_v50 = vpack.c.bf16 %v2682_v42, %v2673_v33  ;;  %v436_v23 = vsub.s32 0, %v435_v21  ;;  %v2764_v28 = vrot.slane %v432_v24, %v440_v25 }
  0xf3   :  { %v388_v41 = vpack.c.bf16 %v293_v32, %v290_v26  ;;  %v396_v54 = vpack.c.bf16 %v2685_v44, %v2679_v39  ;;  %v2389_v44 = vld [vmem:[%s3107_s7 + $0x10] sm:$0xff]  }
  0xf4   :  { %v405_v20 = vmax.bf16 %v2403_v34, %v389_v38  ;;  %v413_v8 = vmax.bf16 %v2403_v34, %v397_v50  ;;  %v2762_v26 = vrot.slane %v432_v24, %v436_v23  ;;  %v2387_v38 = vld [vmem:[%s3107_s7] sm:$0xff]  }
  0xf5   :  { %v2210_v48 = vpop.f32.mrb[12].mxu0  ;;  %v2226_v61 = vpop.f32.mrb[12].mxu1  ;;  %v404_v19 = vmax.bf16 %v2403_v34, %v388_v41  ;;  %v412_v0 = vmax.bf16 %v2403_v34, %v396_v54  ;;  %2228 = vmatprep.subr.bf16.mxu1 %v2387_v38 }
  0xf6   :  { %v314_v51 = vadd.f32 %v2210_v48, %v2586_v36  ;;  %v305_v52 = vpop.f32.mrb[13].mxu0  ;;  %v378_v1 = vadd.f32 %v2226_v61, %v2586_v36  ;;  %v369_v2 = vpop.f32.mrb[13].mxu1  ;;  %2229 = vmatpush3.bf16.msra.mxu1 %v2387_v38 }
  0xf7   :  { %577 = vmatmul.mubr.bf16.gmra.mrb[24].mxu1 %v402_v47  ;;  %v306_v55 = vadd.f32 %v2586_v36, %v305_v52  ;;  %v2211_v57 = vpop.f32.mrb[14].mxu0  ;;  %v370_v5 = vadd.f32 %v2586_v36, %v369_v2  ;;  %v2227_v6 = vpop.f32.mrb[14].mxu1  ;;  %2230 = vmatprep.subr.bf16.mxu1 %v2388_v40 }
  0xf8   :  { %586 = vmatprep.mubr.bf16.mxu1 %v2403_v34  ;;  %v317_v58 = vadd.f32 %v2211_v57, %v2586_v36  ;;  %v308_v59 = vpop.f32.mrb[15].mxu0  ;;  %v381_v9 = vadd.f32 %v2227_v6, %v2586_v36  ;;  %v372_v10 = vpop.f32.mrb[15].mxu1  ;;  %v2390_v57 = vld [vmem:[%s3107_s7 + $0x18] sm:$0xff]  }
  0xf9   :  { %v309_v63 = vadd.f32 %v2586_v36, %v308_v59  ;;  %v373_v13 = vadd.f32 %v2586_v36, %v372_v10 }
  0xfa   :  { %v391_v4 = vpack.c.bf16 %v317_v58, %v314_v51  ;;  %v399_v16 = vpack.c.bf16 %v381_v9, %v378_v1  ;;  %2231 = vmatpush3.bf16.msra.mxu1 %v2388_v40 }
  0xfb   :  { %v390_v7 = vpack.c.bf16 %v309_v63, %v306_v55  ;;  %v398_v18 = vpack.c.bf16 %v373_v13, %v370_v5  ;;  %2232 = vmatprep.subr.bf16.mxu1 %v2389_v44 }
  0xfc   :  { %v407_v62 = vmax.bf16 %v2403_v34, %v391_v4  ;;  %v415_v15 = vmax.bf16 %v2403_v34, %v399_v16 }
  0xfd   :  { %v406_v36 = vmax.bf16 %v2403_v34, %v390_v7  ;;  %v414_v12 = vmax.bf16 %v2403_v34, %v398_v18 }
  0xfe   :  { %2233 = vmatpush3.bf16.msra.mxu1 %v2389_v44 }
  0xff   :  { %587 = vmatmul.mubr.bf16.gmra.mrb[28].mxu1 %v403_v14  ;;  %2234 = vmatprep.subr.bf16.mxu1 %v2390_v57 }
 0x100   :  { %596 = vmatprep.mubr.bf16.mxu1 %v2403_v34 }
 0x102   :  { %2235 = vmatpush3.bf16.msra.mxu1 %v2390_v57 }
 0x107   :  { %597 = vmatmul.mubr.bf16.gmra.mrb[32].mxu1 %v404_v19 }
 0x108   :  { %606 = vmatprep.mubr.bf16.mxu1 %v2403_v34 }
 0x10f   :  { %607 = vmatmul.mubr.bf16.gmra.mrb[36].mxu1 %v405_v20 }
 0x110   :  { %616 = vmatprep.mubr.bf16.mxu1 %v2403_v34 }
 0x117   :  { %617 = vmatmul.mubr.bf16.gmra.mrb[40].mxu1 %v406_v36 }
 0x118   :  { %626 = vmatprep.mubr.bf16.mxu1 %v2403_v34 }
 0x11f   :  { %627 = vmatmul.mubr.bf16.gmra.mrb[44].mxu1 %v407_v62 }
 0x120   :  { %636 = vmatprep.mubr.bf16.mxu1 %v2403_v34 }
 0x127   :  { %637 = vmatmul.mubr.bf16.gmra.mrb[48].mxu1 %v408_v3 }
 0x128   :  { %646 = vmatprep.mubr.bf16.mxu1 %v2403_v34 }
 0x12f   :  { %647 = vmatmul.mubr.bf16.gmra.mrb[52].mxu1 %v409_v11 }
 0x130   :  { %656 = vmatprep.mubr.bf16.mxu1 %v2403_v34 }
 0x137   :  { %657 = vmatmul.mubr.bf16.gmra.mrb[56].mxu1 %v410_v22 }
 0x138   :  { %666 = vmatprep.mubr.bf16.mxu1 %v2403_v34 }
 0x13f   :  { %667 = vmatmul.mubr.bf16.gmra.mrb[60].mxu1 %v411_v53 }
 0x140   :  { %676 = vmatprep.mubr.bf16.mxu1 %v2403_v34 }
 0x147   :  { %677 = vmatmul.mubr.bf16.gmra.mrb[64].mxu1 %v412_v0 }
 0x148   :  { %686 = vmatprep.mubr.bf16.mxu1 %v2403_v34 }
 0x14f   :  { %687 = vmatmul.mubr.bf16.gmra.mrb[68].mxu1 %v413_v8 }
 0x150   :  { %696 = vmatprep.mubr.bf16.mxu1 %v2403_v34 }
 0x157   :  { %697 = vmatmul.mubr.bf16.gmra.mrb[72].mxu1 %v414_v12 }
 0x158   :  { %706 = vmatprep.mubr.bf16.mxu1 %v2403_v34 }
 0x15f   :  { %707 = vmatmul.mubr.bf16.gmra.mrb[76].mxu1 %v415_v15 }
 0x1ba   :  { %v558_v27 = vpop.f32.mrb[16].mxu1 }
 0x1bb   :  { %v560_v29 = vpop.f32.mrb[17].mxu1  ;;  %v559_v31 = vadd.f32 %v558_v27, %v2762_v26 }
 0x1bc   :  { %v562_v30 = vpop.f32.mrb[18].mxu1  ;;  %v561_v35 = vadd.f32 %v560_v29, %v2764_v28 }
 0x1bd   :  { %v563_v32 = vadd.f32 %v562_v30, %v2762_v26  ;;  %v564_v33 = vpop.f32.mrb[19].mxu1 }
 0x1be   :  { %v565_v37 = vadd.f32 %v564_v33, %v2764_v28 }
 0x1bf   :  { %v717_v39 = vpack.c.bf16 %v563_v32, %v559_v31 }
 0x1c0   :  { %v718_v41 = vpack.c.bf16 %v565_v37, %v561_v35 }
 0x1c1   :  { %v749_v46 = vmax.bf16 %v2403_v34, %v717_v39 }
 0x1c2   :  { %v568_v42 = vpop.f32.mrb[20].mxu1  ;;  %v750_v43 = vmax.bf16 %v2403_v34, %v718_v41 }
 0x1c3   :  { %v570_v47 = vpop.f32.mrb[21].mxu1  ;;  %v569_v50 = vadd.f32 %v568_v42, %v2762_v26 }
 0x1c4   :  { %v572_v48 = vpop.f32.mrb[22].mxu1  ;;  %948 = vmatprep.mubr.bf16.mxu0 %v750_v43  ;;  %v571_v54 = vadd.f32 %v570_v47, %v2764_v28 }
 0x1c5   :  { %v573_v51 = vadd.f32 %v572_v48, %v2762_v26  ;;  %v574_v52 = vpop.f32.mrb[23].mxu1  ;;  %949 = vmatmul.mubr.bf16.vlgmr.msra.gmra.mrb[16].mxu0 %v749_v46 }
 0x1c6   :  { %v575_v55 = vadd.f32 %v574_v52, %v2764_v28 }
 0x1c7   :  { %v719_v58 = vpack.c.bf16 %v573_v51, %v569_v50 }
 0x1c8   :  { %v720_v59 = vpack.c.bf16 %v575_v55, %v571_v54 }
 0x1c9   :  { %v751_v2 = vmax.bf16 %v2403_v34, %v719_v58 }
 0x1ca   :  { %v578_v61 = vpop.f32.mrb[24].mxu1  ;;  %v752_v63 = vmax.bf16 %v2403_v34, %v720_v59 }
 0x1cb   :  { %v580_v1 = vpop.f32.mrb[25].mxu1  ;;  %v579_v5 = vadd.f32 %v578_v61, %v2762_v26 }
 0x1cc   :  { %v582_v4 = vpop.f32.mrb[26].mxu1  ;;  %956 = vmatprep.mubr.bf16.mxu0 %v752_v63  ;;  %v581_v9 = vadd.f32 %v580_v1, %v2764_v28 }
 0x1cd   :  { %v583_v6 = vadd.f32 %v582_v4, %v2762_v26  ;;  %v584_v7 = vpop.f32.mrb[27].mxu1  ;;  %957 = vmatmul.mubr.bf16.gmra.mrb[20].mxu0 %v751_v2 }
 0x1ce   :  { %v585_v10 = vadd.f32 %v584_v7, %v2764_v28 }
 0x1cf   :  { %v721_v13 = vpack.c.bf16 %v583_v6, %v579_v5 }
 0x1d0   :  { %v722_v14 = vpack.c.bf16 %v585_v10, %v581_v9 }
 0x1d1   :  { %v753_v20 = vmax.bf16 %v2403_v34, %v721_v13 }
 0x1d2   :  { %v588_v16 = vpop.f32.mrb[28].mxu1  ;;  %v754_v18 = vmax.bf16 %v2403_v34, %v722_v14 }
 0x1d3   :  { %v590_v19 = vpop.f32.mrb[29].mxu1  ;;  %v589_v62 = vadd.f32 %v588_v16, %v2762_v26 }
 0x1d4   :  { %v592_v36 = vpop.f32.mrb[30].mxu1  ;;  %964 = vmatprep.mubr.bf16.mxu0 %v754_v18  ;;  %v591_v22 = vadd.f32 %v590_v19, %v2764_v28 }
 0x1d5   :  { %v593_v3 = vadd.f32 %v592_v36, %v2762_v26  ;;  %v594_v11 = vpop.f32.mrb[31].mxu1  ;;  %965 = vmatmul.mubr.bf16.gmra.mrb[24].mxu0 %v753_v20 }
 0x1d6   :  { %v595_v49 = vadd.f32 %v594_v11, %v2764_v28 }
 0x1d7   :  { %v723_v45 = vpack.c.bf16 %v593_v3, %v589_v62 }
 0x1d8   :  { %v724_v53 = vpack.c.bf16 %v595_v49, %v591_v22 }
 0x1d9   :  { %v755_v8 = vmax.bf16 %v2403_v34, %v723_v45 }
 0x1da   :  { %v598_v56 = vpop.f32.mrb[32].mxu1  ;;  %v756_v60 = vmax.bf16 %v2403_v34, %v724_v53 }
 0x1db   :  { %v600_v0 = vpop.f32.mrb[33].mxu1  ;;  %v599_v15 = vadd.f32 %v598_v56, %v2762_v26 }
 0x1dc   :  { %v602_v12 = vpop.f32.mrb[34].mxu1  ;;  %972 = vmatprep.mubr.bf16.mxu0 %v756_v60  ;;  %v601_v23 = vadd.f32 %v600_v0, %v2764_v28 }
 0x1dd   :  { %v603_v17 = vadd.f32 %v602_v12, %v2762_v26  ;;  %v604_v21 = vpop.f32.mrb[35].mxu1  ;;  %973 = vmatmul.mubr.bf16.gmra.mrb[28].mxu0 %v755_v8 }
 0x1de   :  { %v605_v24 = vadd.f32 %v604_v21, %v2764_v28 }
 0x1df   :  { %v725_v25 = vpack.c.bf16 %v603_v17, %v599_v15 }
 0x1e0   :  { %v726_v27 = vpack.c.bf16 %v605_v24, %v601_v23 }
 0x1e1   :  { %v757_v32 = vmax.bf16 %v2403_v34, %v725_v25 }
 0x1e2   :  { %v608_v29 = vpop.f32.mrb[36].mxu1  ;;  %v758_v30 = vmax.bf16 %v2403_v34, %v726_v27 }
 0x1e3   :  { %v610_v31 = vpop.f32.mrb[37].mxu1  ;;  %v609_v35 = vadd.f32 %v608_v29, %v2762_v26 }
 0x1e4   :  { %v612_v33 = vpop.f32.mrb[38].mxu1  ;;  %980 = vmatprep.mubr.bf16.mxu0 %v758_v30  ;;  %v611_v39 = vadd.f32 %v610_v31, %v2764_v28 }
 0x1e5   :  { %v613_v37 = vadd.f32 %v612_v33, %v2762_v26  ;;  %v614_v38 = vpop.f32.mrb[39].mxu1  ;;  %981 = vmatmul.mubr.bf16.gmra.mrb[32].mxu0 %v757_v32 }
 0x1e6   :  { %v615_v40 = vadd.f32 %v614_v38, %v2764_v28 }
 0x1e7   :  { %v727_v41 = vpack.c.bf16 %v613_v37, %v609_v35 }
 0x1e8   :  { %v728_v42 = vpack.c.bf16 %v615_v40, %v611_v39 }
 0x1e9   :  { %v759_v47 = vmax.bf16 %v2403_v34, %v727_v41 }
 0x1ea   :  { %v618_v43 = vpop.f32.mrb[40].mxu1  ;;  %v760_v44 = vmax.bf16 %v2403_v34, %v728_v42 }
 0x1eb   :  { %v620_v46 = vpop.f32.mrb[41].mxu1  ;;  %v619_v50 = vadd.f32 %v618_v43, %v2762_v26 }
 0x1ec   :  { %v622_v48 = vpop.f32.mrb[42].mxu1  ;;  %988 = vmatprep.mubr.bf16.mxu0 %v760_v44  ;;  %v621_v54 = vadd.f32 %v620_v46, %v2764_v28 }
 0x1ed   :  { %v623_v51 = vadd.f32 %v622_v48, %v2762_v26  ;;  %v624_v52 = vpop.f32.mrb[43].mxu1  ;;  %989 = vmatmul.mubr.bf16.gmra.mrb[36].mxu0 %v759_v47 }
 0x1ee   :  { %v625_v55 = vadd.f32 %v624_v52, %v2764_v28 }
 0x1ef   :  { %v729_v57 = vpack.c.bf16 %v623_v51, %v619_v50 }
 0x1f0   :  { %v730_v58 = vpack.c.bf16 %v625_v55, %v621_v54 }
 0x1f1   :  { %v761_v1 = vmax.bf16 %v2403_v34, %v729_v57 }
 0x1f2   :  { %v628_v59 = vpop.f32.mrb[44].mxu1  ;;  %v762_v61 = vmax.bf16 %v2403_v34, %v730_v58 }
 0x1f3   :  { %v630_v63 = vpop.f32.mrb[45].mxu1  ;;  %v629_v4 = vadd.f32 %v628_v59, %v2762_v26 }
 0x1f4   :  { %v632_v2 = vpop.f32.mrb[46].mxu1  ;;  %996 = vmatprep.mubr.bf16.mxu0 %v762_v61  ;;  %v631_v7 = vadd.f32 %v630_v63, %v2764_v28  ;;  %v2391_v61 = vld [vmem:[%s3107_s7 + $0x20] sm:$0xff]  }
 0x1f5   :  { %v633_v5 = vadd.f32 %v632_v2, %v2762_v26  ;;  %v634_v6 = vpop.f32.mrb[47].mxu1  ;;  %997 = vmatmul.mubr.bf16.gmra.mrb[40].mxu0 %v761_v1  ;;  %2236 = vmatprep.subr.bf16.mxu1 %v2391_v61 }
 0x1f6   :  { %v635_v9 = vadd.f32 %v634_v6, %v2764_v28  ;;  %2237 = vmatpush3.bf16.msra.mxu1 %v2391_v61 }
 0x1f7   :  { %v731_v10 = vpack.c.bf16 %v633_v5, %v629_v4 }
 0x1f8   :  { %v732_v13 = vpack.c.bf16 %v635_v9, %v631_v7 }
 0x1f9   :  { %v763_v19 = vmax.bf16 %v2403_v34, %v731_v10  ;;  %v2392_v10 = vld [vmem:[%s3107_s7 + $0x28] sm:$0xff]  }
 0x1fa   :  { %v638_v14 = vpop.f32.mrb[48].mxu1  ;;  %v764_v16 = vmax.bf16 %v2403_v34, %v732_v13  ;;  %2238 = vmatprep.subr.bf16.mxu1 %v2392_v10 }
 0x1fb   :  { %v640_v18 = vpop.f32.mrb[49].mxu1  ;;  %v639_v36 = vadd.f32 %v638_v14, %v2762_v26  ;;  %2239 = vmatpush3.bf16.msra.mxu1 %v2392_v10  ;;  %v2398_v10 = vld [vmem:[%s3109_s9 + $0x18] sm:$0xff]  }
 0x1fc   :  { %v642_v20 = vpop.f32.mrb[50].mxu1  ;;  %1004 = vmatprep.mubr.bf16.mxu0 %v764_v16  ;;  %v641_v11 = vadd.f32 %v640_v18, %v2764_v28 }
 0x1fd   :  { %v643_v62 = vadd.f32 %v642_v20, %v2762_v26  ;;  %v644_v3 = vpop.f32.mrb[51].mxu1  ;;  %1005 = vmatmul.mubr.bf16.gmra.mrb[44].mxu0 %v763_v19  ;;  %v2393_v19 = vld [vmem:[%s3107_s7 + $0x30] sm:$0xff]  }
 0x1fe   :  { %v645_v22 = vadd.f32 %v644_v3, %v2764_v28  ;;  %2240 = vmatprep.subr.bf16.mxu1 %v2393_v19 }
 0x1ff   :  { %v733_v49 = vpack.c.bf16 %v643_v62, %v639_v36  ;;  %2241 = vmatpush3.bf16.msra.mxu1 %v2393_v19 }
 0x200   :  { %v734_v45 = vpack.c.bf16 %v645_v22, %v641_v11 }
 0x201   :  { %v765_v0 = vmax.bf16 %v2403_v34, %v733_v49 }
 0x202   :  { %v648_v53 = vpop.f32.mrb[52].mxu1  ;;  %v766_v56 = vmax.bf16 %v2403_v34, %v734_v45 }
 0x203   :  { %v650_v60 = vpop.f32.mrb[53].mxu1  ;;  %v649_v12 = vadd.f32 %v648_v53, %v2762_v26  ;;  %v2394_v53 = vld [vmem:[%s3107_s7 + $0x38] sm:$0xff]  }
 0x204   :  { %v652_v8 = vpop.f32.mrb[54].mxu1  ;;  %1012 = vmatprep.mubr.bf16.mxu0 %v766_v56  ;;  %v651_v21 = vadd.f32 %v650_v60, %v2764_v28  ;;  %2242 = vmatprep.subr.bf16.mxu1 %v2394_v53 }
 0x205   :  { %v653_v15 = vadd.f32 %v652_v8, %v2762_v26  ;;  %v654_v17 = vpop.f32.mrb[55].mxu1  ;;  %1013 = vmatmul.mubr.bf16.gmra.mrb[48].mxu0 %v765_v0  ;;  %2243 = vmatpush3.bf16.msra.mxu1 %v2394_v53 }
 0x206   :  { %v655_v23 = vadd.f32 %v654_v17, %v2764_v28 }
 0x207   :  { %v735_v24 = vpack.c.bf16 %v653_v15, %v649_v12 }
 0x208   :  { %v736_v25 = vpack.c.bf16 %v655_v23, %v651_v21 }
 0x209   :  { %v767_v31 = vmax.bf16 %v2403_v34, %v735_v24 }
 0x20a   :  { %v658_v27 = vpop.f32.mrb[56].mxu1  ;;  %v768_v29 = vmax.bf16 %v2403_v34, %v736_v25 }
 0x20b   :  { %v660_v30 = vpop.f32.mrb[57].mxu1  ;;  %v659_v33 = vadd.f32 %v658_v27, %v2762_v26 }
 0x20c   :  { %v662_v32 = vpop.f32.mrb[58].mxu1  ;;  %1020 = vmatprep.mubr.bf16.mxu0 %v768_v29  ;;  %v661_v38 = vadd.f32 %v660_v30, %v2764_v28 }
 0x20d   :  { %v663_v35 = vadd.f32 %v662_v32, %v2762_v26  ;;  %v664_v37 = vpop.f32.mrb[59].mxu1  ;;  %1021 = vmatmul.mubr.bf16.gmra.mrb[52].mxu0 %v767_v31 }
 0x20e   :  { %v665_v39 = vadd.f32 %v664_v37, %v2764_v28 }
 0x20f   :  { %v737_v40 = vpack.c.bf16 %v663_v35, %v659_v33 }
 0x210   :  { %v738_v41 = vpack.c.bf16 %v665_v39, %v661_v38 }
 0x211   :  { %v769_v46 = vmax.bf16 %v2403_v34, %v737_v40 }
 0x212   :  { %v668_v42 = vpop.f32.mrb[60].mxu1  ;;  %v770_v43 = vmax.bf16 %v2403_v34, %v738_v41 }
 0x213   :  { %v670_v44 = vpop.f32.mrb[61].mxu1  ;;  %v669_v48 = vadd.f32 %v668_v42, %v2762_v26 }
 0x214   :  { %v672_v47 = vpop.f32.mrb[62].mxu1  ;;  %1028 = vmatprep.mubr.bf16.mxu0 %v770_v43  ;;  %v671_v52 = vadd.f32 %v670_v44, %v2764_v28 }
 0x215   :  { %v673_v50 = vadd.f32 %v672_v47, %v2762_v26  ;;  %v674_v51 = vpop.f32.mrb[63].mxu1  ;;  %1029 = vmatmul.mubr.bf16.gmra.mrb[56].mxu0 %v769_v46 }
 0x216   :  { %v675_v54 = vadd.f32 %v674_v51, %v2764_v28 }
 0x217   :  { %v739_v55 = vpack.c.bf16 %v673_v50, %v669_v48 }
 0x218   :  { %v740_v57 = vpack.c.bf16 %v675_v54, %v671_v52 }
 0x219   :  { %v771_v1 = vmax.bf16 %v2403_v34, %v739_v55 }
 0x21a   :  { %v678_v58 = vpop.f32.mrb[64].mxu1  ;;  %v772_v59 = vmax.bf16 %v2403_v34, %v740_v57 }
 0x21b   :  { %v680_v63 = vpop.f32.mrb[65].mxu1  ;;  %v679_v4 = vadd.f32 %v678_v58, %v2762_v26 }
 0x21c   :  { %v682_v2 = vpop.f32.mrb[66].mxu1  ;;  %1036 = vmatprep.mubr.bf16.mxu0 %v772_v59  ;;  %v681_v7 = vadd.f32 %v680_v63, %v2764_v28  ;;  %v2396_v59 = vld [vmem:[%s3109_s9 + $0x8] sm:$0xff]  }
 0x21d   :  { %v683_v5 = vadd.f32 %v682_v2, %v2762_v26  ;;  %v684_v6 = vpop.f32.mrb[67].mxu1  ;;  %1037 = vmatmul.mubr.bf16.gmra.mrb[60].mxu0 %v771_v1  ;;  %v2397_v2 = vld [vmem:[%s3109_s9 + $0x10] sm:$0xff]  }
 0x21e   :  { %v685_v9 = vadd.f32 %v684_v6, %v2764_v28 }
 0x21f   :  { %v741_v13 = vpack.c.bf16 %v683_v5, %v679_v4 }
 0x220   :  { %v742_v14 = vpack.c.bf16 %v685_v9, %v681_v7 }
 0x221   :  { %v773_v36 = vmax.bf16 %v2403_v34, %v741_v13 }
 0x222   :  { %v688_v16 = vpop.f32.mrb[68].mxu1  ;;  %v774_v18 = vmax.bf16 %v2403_v34, %v742_v14 }
 0x223   :  { %v690_v20 = vpop.f32.mrb[69].mxu1  ;;  %v689_v3 = vadd.f32 %v688_v16, %v2762_v26 }
 0x224   :  { %v692_v62 = vpop.f32.mrb[70].mxu1  ;;  %1044 = vmatprep.mubr.bf16.mxu0 %v774_v18  ;;  %v691_v49 = vadd.f32 %v690_v20, %v2764_v28  ;;  %v2399_v20 = vld [vmem:[%s3109_s9 + $0x20] sm:$0xff]  }
 0x225   :  { %v693_v11 = vadd.f32 %v692_v62, %v2762_v26  ;;  %v694_v22 = vpop.f32.mrb[71].mxu1  ;;  %1045 = vmatmul.mubr.bf16.gmra.mrb[64].mxu0 %v773_v36 }
 0x226   :  { %v695_v45 = vadd.f32 %v694_v22, %v2764_v28 }
 0x227   :  { %v743_v56 = vpack.c.bf16 %v693_v11, %v689_v3 }
 0x228   :  { %v744_v60 = vpack.c.bf16 %v695_v45, %v691_v49  ;;  %v2400_v49 = vld [vmem:[%s3109_s9 + $0x28] sm:$0xff]  }
 0x229   :  { %v775_v15 = vmax.bf16 %v2403_v34, %v743_v56 }
 0x22a   :  { %v698_v0 = vpop.f32.mrb[72].mxu1  ;;  %v776_v8 = vmax.bf16 %v2403_v34, %v744_v60 }
 0x22b   :  { %v700_v12 = vpop.f32.mrb[73].mxu1  ;;  %v699_v21 = vadd.f32 %v698_v0, %v2762_v26 }
 0x22c   :  { %v702_v17 = vpop.f32.mrb[74].mxu1  ;;  %1052 = vmatprep.mubr.bf16.mxu0 %v776_v8  ;;  %v701_v25 = vadd.f32 %v700_v12, %v2764_v28 }
 0x22d   :  { %v703_v23 = vadd.f32 %v702_v17, %v2762_v26  ;;  %v704_v24 = vpop.f32.mrb[75].mxu1  ;;  %1053 = vmatmul.mubr.bf16.gmra.mrb[68].mxu0 %v775_v15 }
 0x22e   :  { %v705_v27 = vadd.f32 %v704_v24, %v2764_v28 }
 0x22f   :  { %v745_v29 = vpack.c.bf16 %v703_v23, %v699_v21 }
 0x230   :  { %v746_v30 = vpack.c.bf16 %v705_v27, %v701_v25 }
 0x231   :  { %v777_v35 = vmax.bf16 %v2403_v34, %v745_v29 }
 0x232   :  { %v708_v31 = vpop.f32.mrb[76].mxu1  ;;  %v778_v32 = vmax.bf16 %v2403_v34, %v746_v30 }
 0x233   :  { %v710_v33 = vpop.f32.mrb[77].mxu1  ;;  %v709_v38 = vadd.f32 %v708_v31, %v2762_v26 }
 0x234   :  { %v712_v37 = vpop.f32.mrb[78].mxu1  ;;  %1060 = vmatprep.mubr.bf16.mxu0 %v778_v32  ;;  %v711_v41 = vadd.f32 %v710_v33, %v2764_v28 }
 0x235   :  { %v713_v39 = vadd.f32 %v712_v37, %v2762_v26  ;;  %v714_v40 = vpop.f32.mrb[79].mxu1  ;;  %1061 = vmatmul.mubr.bf16.gmra.mrb[72].mxu0 %v777_v35  ;;  %v2889_v26 = vld [vmem:[%s3108_s6] ss:$0 sm:$0xff] }
 0x236   :  { %v715_v42 = vadd.f32 %v714_v40, %v2764_v28  ;;  %v2395_v28 = vld [vmem:[%s3109_s9] sm:$0xff]  }
 0x237   :  { %v747_v43 = vpack.c.bf16 %v713_v39, %v709_v38  ;;  %2276 = vmatprep.subr.bf16.mxu0 %v2395_v28 }
 0x238   :  { %v748_v44 = vpack.c.bf16 %v715_v42, %v711_v41  ;;  %2277 = vmatpush3.bf16.msra.mxu0 %v2395_v28 }
 0x239   :  { %v779_v47 = vmax.bf16 %v2403_v34, %v747_v43  ;;  %2278 = vmatprep.subr.bf16.mxu0 %v2396_v59 }
 0x23a   :  { %v780_v46 = vmax.bf16 %v2403_v34, %v748_v44 }
 0x23c   :  { %1068 = vmatprep.mubr.bf16.mxu0 %v780_v46  ;;  %2279 = vmatpush3.bf16.msra.mxu0 %v2396_v59 }
 0x23d   :  { %1069 = vmatmul.mubr.bf16.gmra.mrb[76].mxu0 %v779_v47  ;;  %2280 = vmatprep.subr.bf16.mxu0 %v2397_v2 }
 0x240   :  { %2281 = vmatpush3.bf16.msra.mxu0 %v2397_v2 }
 0x241   :  { %2282 = vmatprep.subr.bf16.mxu0 %v2398_v10 }
 0x244   :  { %2283 = vmatpush3.bf16.msra.mxu0 %v2398_v10 }
 0x245   :  { %2284 = vmatprep.subr.bf16.mxu0 %v2399_v20 }
 0x248   :  { %2285 = vmatpush3.bf16.msra.mxu0 %v2399_v20 }
 0x249   :  { %2286 = vmatprep.subr.bf16.mxu0 %v2400_v49 }
 0x24c   :  { %2287 = vmatpush3.bf16.msra.mxu0 %v2400_v49 }
 0x298   :  { %v2048_v48 = vpop.f32.mrb[16].mxu0 }
 0x299   :  { %v2049_v50 = vpop.f32.mrb[17].mxu0 }
 0x29a   :  { %v2050_v51 = vadd.f32 %v2049_v50, %v2048_v48  ;;  %v2051_v52 = vpop.f32.mrb[18].mxu0 }
 0x29b   :  { %v2052_v54 = vpop.f32.mrb[19].mxu0 }
 0x29c   :  { %v2053_v55 = vadd.f32 %v2052_v54, %v2051_v52  ;;  %v951_v57 = vadd.f32 %v2050_v51, %v2889_v26 }
 0x29e   :  { %v954_v58 = vadd.f32 %v2053_v55, %v2889_v26 }
 0x2a0   :  { %v1077_v61 = vpack.c.bf16 %v954_v58, %v951_v57  ;;  %v2054_v63 = vpop.f32.mrb[20].mxu0 }
 0x2a1   :  { %v2055_v1 = vpop.f32.mrb[21].mxu0 }
 0x2a2   :  { %v2056_v4 = vadd.f32 %v2055_v1, %v2054_v63  ;;  %v2057_v5 = vpop.f32.mrb[22].mxu0  ;;  %v1093_v6 = vmax.bf16 %v2403_v34, %v1077_v61 }
 0x2a3   :  { %v2058_v7 = vpop.f32.mrb[23].mxu0 }
 0x2a4   :  { %v2059_v9 = vadd.f32 %v2058_v7, %v2057_v5  ;;  %2244 = vmatprep.mubr.bf16.mxu1 %v1093_v6  ;;  %v959_v13 = vadd.f32 %v2056_v4, %v2889_v26 }
 0x2a6   :  { %v962_v14 = vadd.f32 %v2059_v9, %v2889_v26 }
 0x2a8   :  { %v1078_v16 = vpack.c.bf16 %v962_v14, %v959_v13  ;;  %v2060_v18 = vpop.f32.mrb[24].mxu0 }
 0x2a9   :  { %v2061_v19 = vpop.f32.mrb[25].mxu0 }
 0x2aa   :  { %v1094_v36 = vmax.bf16 %v2403_v34, %v1078_v16  ;;  %v2062_v62 = vadd.f32 %v2061_v19, %v2060_v18  ;;  %v2063_v3 = vpop.f32.mrb[26].mxu0 }
 0x2ab   :  { %v2064_v11 = vpop.f32.mrb[27].mxu0 }
 0x2ac   :  { %v2065_v22 = vadd.f32 %v2064_v11, %v2063_v3  ;;  %2245 = vmatmul.mubr.bf16.vlgmr.msra.gmra.mrb[80].mxu1 %v1094_v36  ;;  %v967_v45 = vadd.f32 %v2062_v62, %v2889_v26 }
 0x2ae   :  { %v970_v53 = vadd.f32 %v2065_v22, %v2889_v26 }
 0x2b0   :  { %v1079_v56 = vpack.c.bf16 %v970_v53, %v967_v45  ;;  %v2066_v60 = vpop.f32.mrb[28].mxu0 }
 0x2b1   :  { %v2067_v0 = vpop.f32.mrb[29].mxu0 }
 0x2b2   :  { %v2068_v8 = vadd.f32 %v2067_v0, %v2066_v60  ;;  %v2069_v12 = vpop.f32.mrb[30].mxu0  ;;  %v1095_v15 = vmax.bf16 %v2403_v34, %v1079_v56 }
 0x2b3   :  { %v2070_v17 = vpop.f32.mrb[31].mxu0 }
 0x2b4   :  { %v2071_v21 = vadd.f32 %v2070_v17, %v2069_v12  ;;  %2248 = vmatprep.mubr.bf16.mxu1 %v1095_v15  ;;  %v975_v23 = vadd.f32 %v2068_v8, %v2889_v26 }
 0x2b6   :  { %v978_v24 = vadd.f32 %v2071_v21, %v2889_v26 }
 0x2b8   :  { %v1080_v25 = vpack.c.bf16 %v978_v24, %v975_v23  ;;  %v2072_v27 = vpop.f32.mrb[32].mxu0 }
 0x2b9   :  { %v2073_v29 = vpop.f32.mrb[33].mxu0 }
 0x2ba   :  { %v2074_v30 = vadd.f32 %v2073_v29, %v2072_v27  ;;  %v2075_v31 = vpop.f32.mrb[34].mxu0  ;;  %v1096_v32 = vmax.bf16 %v2403_v34, %v1080_v25 }
 0x2bb   :  { %v2076_v33 = vpop.f32.mrb[35].mxu0 }
 0x2bc   :  { %v2077_v35 = vadd.f32 %v2076_v33, %v2075_v31  ;;  %2249 = vmatmul.mubr.bf16.gmra.mrb[84].mxu1 %v1096_v32  ;;  %v983_v37 = vadd.f32 %v2074_v30, %v2889_v26 }
 0x2be   :  { %v986_v38 = vadd.f32 %v2077_v35, %v2889_v26 }
 0x2c0   :  { %v1081_v39 = vpack.c.bf16 %v986_v38, %v983_v37  ;;  %v2078_v40 = vpop.f32.mrb[36].mxu0 }
 0x2c1   :  { %v2079_v41 = vpop.f32.mrb[37].mxu0 }
 0x2c2   :  { %v2080_v42 = vadd.f32 %v2079_v41, %v2078_v40  ;;  %v2081_v43 = vpop.f32.mrb[38].mxu0  ;;  %v1097_v44 = vmax.bf16 %v2403_v34, %v1081_v39 }
 0x2c3   :  { %v2082_v46 = vpop.f32.mrb[39].mxu0 }
 0x2c4   :  { %v2083_v47 = vadd.f32 %v2082_v46, %v2081_v43  ;;  %2252 = vmatprep.mubr.bf16.mxu1 %v1097_v44  ;;  %v991_v48 = vadd.f32 %v2080_v42, %v2889_v26 }
 0x2c6   :  { %v994_v50 = vadd.f32 %v2083_v47, %v2889_v26 }
 0x2c8   :  { %v1082_v51 = vpack.c.bf16 %v994_v50, %v991_v48  ;;  %v2084_v52 = vpop.f32.mrb[40].mxu0 }
 0x2c9   :  { %v2085_v54 = vpop.f32.mrb[41].mxu0 }
 0x2ca   :  { %v2086_v55 = vadd.f32 %v2085_v54, %v2084_v52  ;;  %v2087_v28 = vpop.f32.mrb[42].mxu0  ;;  %v1098_v57 = vmax.bf16 %v2403_v34, %v1082_v51 }
 0x2cb   :  { %v2088_v58 = vpop.f32.mrb[43].mxu0 }
 0x2cc   :  { %v2089_v59 = vadd.f32 %v2088_v58, %v2087_v28  ;;  %2253 = vmatmul.mubr.bf16.gmra.mrb[88].mxu1 %v1098_v57  ;;  %v999_v61 = vadd.f32 %v2086_v55, %v2889_v26 }
 0x2ce   :  { %v1002_v63 = vadd.f32 %v2089_v59, %v2889_v26 }
 0x2d0   :  { %v1083_v1 = vpack.c.bf16 %v1002_v63, %v999_v61  ;;  %v2090_v2 = vpop.f32.mrb[44].mxu0 }
 0x2d1   :  { %v2091_v4 = vpop.f32.mrb[45].mxu0 }
 0x2d2   :  { %v2092_v5 = vadd.f32 %v2091_v4, %v2090_v2  ;;  %v2093_v6 = vpop.f32.mrb[46].mxu0  ;;  %v1099_v7 = vmax.bf16 %v2403_v34, %v1083_v1  ;;  %v2401_v1 = vld [vmem:[%s3109_s9 + $0x30] sm:$0xff]  }
 0x2d3   :  { %v2094_v9 = vpop.f32.mrb[47].mxu0  ;;  %2288 = vmatprep.subr.bf16.mxu0 %v2401_v1 }
 0x2d4   :  { %v2095_v10 = vadd.f32 %v2094_v9, %v2093_v6  ;;  %2256 = vmatprep.mubr.bf16.mxu1 %v1099_v7  ;;  %v1007_v13 = vadd.f32 %v2092_v5, %v2889_v26  ;;  %2289 = vmatpush3.bf16.msra.mxu0 %v2401_v1 }
 0x2d6   :  { %v1010_v14 = vadd.f32 %v2095_v10, %v2889_v26  ;;  %v2402_v10 = vld [vmem:[%s3109_s9 + $0x38] sm:$0xff]  }
 0x2d7   :  { %2290 = vmatprep.subr.bf16.mxu0 %v2402_v10 }
 0x2d8   :  { %v1084_v16 = vpack.c.bf16 %v1010_v14, %v1007_v13  ;;  %v2096_v18 = vpop.f32.mrb[48].mxu0  ;;  %2291 = vmatpush3.bf16.msra.mxu0 %v2402_v10 }
 0x2d9   :  { %v2097_v19 = vpop.f32.mrb[49].mxu0 }
 0x2da   :  { %v2098_v20 = vadd.f32 %v2097_v19, %v2096_v18  ;;  %v2099_v36 = vpop.f32.mrb[50].mxu0  ;;  %v1100_v62 = vmax.bf16 %v2403_v34, %v1084_v16 }
 0x2db   :  { %v2100_v3 = vpop.f32.mrb[51].mxu0 }
 0x2dc   :  { %v2101_v11 = vadd.f32 %v2100_v3, %v2099_v36  ;;  %2257 = vmatmul.mubr.bf16.gmra.mrb[92].mxu1 %v1100_v62  ;;  %v1015_v22 = vadd.f32 %v2098_v20, %v2889_v26 }
 0x2de   :  { %v1018_v49 = vadd.f32 %v2101_v11, %v2889_v26 }
 0x2e0   :  { %v1085_v45 = vpack.c.bf16 %v1018_v49, %v1015_v22  ;;  %v2102_v53 = vpop.f32.mrb[52].mxu0 }
 0x2e1   :  { %v2103_v56 = vpop.f32.mrb[53].mxu0 }
 0x2e2   :  { %v2104_v60 = vadd.f32 %v2103_v56, %v2102_v53  ;;  %v2105_v0 = vpop.f32.mrb[54].mxu0  ;;  %v1101_v8 = vmax.bf16 %v2403_v34, %v1085_v45 }
 0x2e3   :  { %v2106_v12 = vpop.f32.mrb[55].mxu0 }
 0x2e4   :  { %v2107_v15 = vadd.f32 %v2106_v12, %v2105_v0  ;;  %2260 = vmatprep.mubr.bf16.mxu1 %v1101_v8  ;;  %v1023_v17 = vadd.f32 %v2104_v60, %v2889_v26 }
 0x2e6   :  { %v1026_v21 = vadd.f32 %v2107_v15, %v2889_v26 }
 0x2e8   :  { %v1086_v23 = vpack.c.bf16 %v1026_v21, %v1023_v17  ;;  %v2108_v24 = vpop.f32.mrb[56].mxu0 }
 0x2e9   :  { %v2109_v25 = vpop.f32.mrb[57].mxu0 }
 0x2ea   :  { %v2110_v27 = vadd.f32 %v2109_v25, %v2108_v24  ;;  %v2111_v29 = vpop.f32.mrb[58].mxu0  ;;  %v1102_v30 = vmax.bf16 %v2403_v34, %v1086_v23 }
 0x2eb   :  { %v2112_v31 = vpop.f32.mrb[59].mxu0 }
 0x2ec   :  { %v2113_v32 = vadd.f32 %v2112_v31, %v2111_v29  ;;  %2261 = vmatmul.mubr.bf16.gmra.mrb[96].mxu1 %v1102_v30  ;;  %v1031_v33 = vadd.f32 %v2110_v27, %v2889_v26  ;;  %v2966_v27 = vld [vmem:[%s3110_s8] ss:$0 sm:$0xff] }
 0x2ee   :  { %v1034_v35 = vadd.f32 %v2113_v32, %v2889_v26 }
 0x2f0   :  { %v1087_v37 = vpack.c.bf16 %v1034_v35, %v1031_v33  ;;  %v2114_v38 = vpop.f32.mrb[60].mxu0 }
 0x2f1   :  { %v2115_v39 = vpop.f32.mrb[61].mxu0 }
 0x2f2   :  { %v2116_v40 = vadd.f32 %v2115_v39, %v2114_v38  ;;  %v2117_v41 = vpop.f32.mrb[62].mxu0  ;;  %v1103_v42 = vmax.bf16 %v2403_v34, %v1087_v37 }
 0x2f3   :  { %v2118_v43 = vpop.f32.mrb[63].mxu0 }
 0x2f4   :  { %v2119_v44 = vadd.f32 %v2118_v43, %v2117_v41  ;;  %2264 = vmatprep.mubr.bf16.mxu1 %v1103_v42  ;;  %v1039_v46 = vadd.f32 %v2116_v40, %v2889_v26 }
 0x2f6   :  { %v1042_v47 = vadd.f32 %v2119_v44, %v2889_v26 }
 0x2f8   :  { %v1088_v48 = vpack.c.bf16 %v1042_v47, %v1039_v46  ;;  %v2120_v50 = vpop.f32.mrb[64].mxu0 }
 0x2f9   :  { %v2121_v51 = vpop.f32.mrb[65].mxu0 }
 0x2fa   :  { %v2122_v52 = vadd.f32 %v2121_v51, %v2120_v50  ;;  %v2123_v54 = vpop.f32.mrb[66].mxu0  ;;  %v1104_v55 = vmax.bf16 %v2403_v34, %v1088_v48 }
 0x2fb   :  { %v2124_v28 = vpop.f32.mrb[67].mxu0 }
 0x2fc   :  { %v2125_v57 = vadd.f32 %v2124_v28, %v2123_v54  ;;  %2265 = vmatmul.mubr.bf16.gmra.mrb[100].mxu1 %v1104_v55  ;;  %v1047_v58 = vadd.f32 %v2122_v52, %v2889_v26 }
 0x2fe   :  { %v1050_v59 = vadd.f32 %v2125_v57, %v2889_v26 }
 0x300   :  { %v1089_v61 = vpack.c.bf16 %v1050_v59, %v1047_v58  ;;  %v2126_v63 = vpop.f32.mrb[68].mxu0 }
 0x301   :  { %v2127_v2 = vpop.f32.mrb[69].mxu0 }
 0x302   :  { %v2128_v4 = vadd.f32 %v2127_v2, %v2126_v63  ;;  %v2129_v5 = vpop.f32.mrb[70].mxu0  ;;  %v1105_v6 = vmax.bf16 %v2403_v34, %v1089_v61 }
 0x303   :  { %v2130_v7 = vpop.f32.mrb[71].mxu0 }
 0x304   :  { %v2131_v9 = vadd.f32 %v2130_v7, %v2129_v5  ;;  %2268 = vmatprep.mubr.bf16.mxu1 %v1105_v6  ;;  %v1055_v13 = vadd.f32 %v2128_v4, %v2889_v26 }
 0x306   :  { %v1058_v14 = vadd.f32 %v2131_v9, %v2889_v26 }
 0x308   :  { %v1090_v16 = vpack.c.bf16 %v1058_v14, %v1055_v13  ;;  %v2132_v18 = vpop.f32.mrb[72].mxu0 }
 0x309   :  { %v2133_v19 = vpop.f32.mrb[73].mxu0 }
 0x30a   :  { %v2134_v20 = vadd.f32 %v2133_v19, %v2132_v18  ;;  %v2135_v36 = vpop.f32.mrb[74].mxu0  ;;  %v1106_v62 = vmax.bf16 %v2403_v34, %v1090_v16 }
 0x30b   :  { %v2136_v3 = vpop.f32.mrb[75].mxu0 }
 0x30c   :  { %v2137_v11 = vadd.f32 %v2136_v3, %v2135_v36  ;;  %2269 = vmatmul.mubr.bf16.gmra.mrb[104].mxu1 %v1106_v62  ;;  %v1063_v22 = vadd.f32 %v2134_v20, %v2889_v26 }
 0x30e   :  { %v1066_v49 = vadd.f32 %v2137_v11, %v2889_v26 }
 0x310   :  { %v1091_v45 = vpack.c.bf16 %v1066_v49, %v1063_v22  ;;  %v2138_v53 = vpop.f32.mrb[76].mxu0 }
 0x311   :  { %v2139_v56 = vpop.f32.mrb[77].mxu0 }
 0x312   :  { %v2140_v60 = vadd.f32 %v2139_v56, %v2138_v53  ;;  %v2141_v0 = vpop.f32.mrb[78].mxu0  ;;  %v1107_v8 = vmax.bf16 %v2403_v34, %v1091_v45 }
 0x313   :  { %v2142_v12 = vpop.f32.mrb[79].mxu0 }
 0x314   :  { %v2143_v15 = vadd.f32 %v2142_v12, %v2141_v0  ;;  %2272 = vmatprep.mubr.bf16.mxu1 %v1107_v8  ;;  %v1071_v17 = vadd.f32 %v2140_v60, %v2889_v26 }
 0x316   :  { %v1074_v21 = vadd.f32 %v2143_v15, %v2889_v26 }
 0x318   :  { %v1092_v23 = vpack.c.bf16 %v1074_v21, %v1071_v17 }
 0x31a   :  { %v1108_v24 = vmax.bf16 %v2403_v34, %v1092_v23 }
 0x31c   :  { %2273 = vmatmul.mubr.bf16.gmra.mrb[108].mxu1 %v1108_v24 }
 0x37f   :  { %v2246_v25 = vpop.f32.mrb[80].mxu1 }
 0x380   :  { %v1214_v29 = vpop.f32.mrb[81].mxu1  ;;  %v1223_v31 = vadd.f32 %v2246_v25, %v2966_v27 }
 0x381   :  { %v2247_v30 = vpop.f32.mrb[82].mxu1  ;;  %v1215_v35 = vadd.f32 %v2966_v27, %v1214_v29 }
 0x382   :  { %v1226_v32 = vadd.f32 %v2247_v30, %v2966_v27  ;;  %v1217_v33 = vpop.f32.mrb[83].mxu1 }
 0x383   :  { %v1218_v26 = vadd.f32 %v2966_v27, %v1217_v33 }
 0x384   :  { %v1342_v37 = vpack.c.bf16 %v1226_v32, %v1223_v31 }
 0x385   :  { %v1341_v38 = vpack.c.bf16 %v1218_v26, %v1215_v35 }
 0x386   :  { %v1358_v40 = vmax.bf16 %v2403_v34, %v1342_v37 }
 0x387   :  { %v1357_v39 = vmax.bf16 %v2403_v34, %v1341_v38 }
 0x389   :  { %2292 = vmatprep.mubr.bf16.mxu0 %v1357_v39 }
 0x38a   :  { %2293 = vmatmul.mubr.bf16.vlgmr.msra.gmra.mrb[80].mxu0 %v1358_v40 }
 0x38f   :  { %v2250_v41 = vpop.f32.mrb[84].mxu1 }
 0x390   :  { %v1230_v42 = vpop.f32.mrb[85].mxu1  ;;  %v1239_v44 = vadd.f32 %v2250_v41, %v2966_v27 }
 0x391   :  { %v2251_v43 = vpop.f32.mrb[86].mxu1  ;;  %v1231_v48 = vadd.f32 %v2966_v27, %v1230_v42 }
 0x392   :  { %v1242_v46 = vadd.f32 %v2251_v43, %v2966_v27  ;;  %v1233_v47 = vpop.f32.mrb[87].mxu1 }
 0x393   :  { %v1234_v50 = vadd.f32 %v2966_v27, %v1233_v47 }
 0x394   :  { %v1344_v51 = vpack.c.bf16 %v1242_v46, %v1239_v44 }
 0x395   :  { %v1343_v52 = vpack.c.bf16 %v1234_v50, %v1231_v48 }
 0x396   :  { %v1360_v55 = vmax.bf16 %v2403_v34, %v1344_v51 }
 0x397   :  { %v1359_v54 = vmax.bf16 %v2403_v34, %v1343_v52 }
 0x399   :  { %2296 = vmatprep.mubr.bf16.mxu0 %v1359_v54 }
 0x39a   :  { %2297 = vmatmul.mubr.bf16.gmra.mrb[84].mxu0 %v1360_v55 }
 0x39f   :  { %v2254_v28 = vpop.f32.mrb[88].mxu1 }
 0x3a0   :  { %v1246_v57 = vpop.f32.mrb[89].mxu1  ;;  %v1255_v59 = vadd.f32 %v2254_v28, %v2966_v27 }
 0x3a1   :  { %v2255_v58 = vpop.f32.mrb[90].mxu1  ;;  %v1247_v1 = vadd.f32 %v2966_v27, %v1246_v57 }
 0x3a2   :  { %v1258_v61 = vadd.f32 %v2255_v58, %v2966_v27  ;;  %v1249_v63 = vpop.f32.mrb[91].mxu1 }
 0x3a3   :  { %v1250_v2 = vadd.f32 %v2966_v27, %v1249_v63 }
 0x3a4   :  { %v1346_v4 = vpack.c.bf16 %v1258_v61, %v1255_v59 }
 0x3a5   :  { %v1345_v5 = vpack.c.bf16 %v1250_v2, %v1247_v1 }
 0x3a6   :  { %v1362_v7 = vmax.bf16 %v2403_v34, %v1346_v4 }
 0x3a7   :  { %v1361_v6 = vmax.bf16 %v2403_v34, %v1345_v5 }
 0x3a9   :  { %2300 = vmatprep.mubr.bf16.mxu0 %v1361_v6 }
 0x3aa   :  { %2301 = vmatmul.mubr.bf16.gmra.mrb[88].mxu0 %v1362_v7  ;;  %v3019_v7 = vld [vmem:[%s3111_s10] ss:$0 sm:$0xff] }
 0x3af   :  { %v2258_v9 = vpop.f32.mrb[92].mxu1 }
 0x3b0   :  { %v1262_v10 = vpop.f32.mrb[93].mxu1  ;;  %v1271_v14 = vadd.f32 %v2258_v9, %v2966_v27 }
 0x3b1   :  { %v2259_v13 = vpop.f32.mrb[94].mxu1  ;;  %v1263_v19 = vadd.f32 %v2966_v27, %v1262_v10 }
 0x3b2   :  { %v1274_v16 = vadd.f32 %v2259_v13, %v2966_v27  ;;  %v1265_v18 = vpop.f32.mrb[95].mxu1 }
 0x3b3   :  { %v1266_v20 = vadd.f32 %v2966_v27, %v1265_v18 }
 0x3b4   :  { %v1348_v36 = vpack.c.bf16 %v1274_v16, %v1271_v14 }
 0x3b5   :  { %v1347_v62 = vpack.c.bf16 %v1266_v20, %v1263_v19 }
 0x3b6   :  { %v1364_v11 = vmax.bf16 %v2403_v34, %v1348_v36 }
 0x3b7   :  { %v1363_v3 = vmax.bf16 %v2403_v34, %v1347_v62 }
 0x3b9   :  { %2304 = vmatprep.mubr.bf16.mxu0 %v1363_v3 }
 0x3ba   :  { %2305 = vmatmul.mubr.bf16.gmra.mrb[92].mxu0 %v1364_v11 }
 0x3bf   :  { %v2262_v22 = vpop.f32.mrb[96].mxu1 }
 0x3c0   :  { %v1278_v49 = vpop.f32.mrb[97].mxu1  ;;  %v1287_v53 = vadd.f32 %v2262_v22, %v2966_v27 }
 0x3c1   :  { %v2263_v45 = vpop.f32.mrb[98].mxu1  ;;  %v1279_v0 = vadd.f32 %v2966_v27, %v1278_v49 }
 0x3c2   :  { %v1290_v56 = vadd.f32 %v2263_v45, %v2966_v27  ;;  %v1281_v60 = vpop.f32.mrb[99].mxu1 }
 0x3c3   :  { %v1282_v8 = vadd.f32 %v2966_v27, %v1281_v60 }
 0x3c4   :  { %v1350_v12 = vpack.c.bf16 %v1290_v56, %v1287_v53 }
 0x3c5   :  { %v1349_v15 = vpack.c.bf16 %v1282_v8, %v1279_v0 }
 0x3c6   :  { %v1366_v21 = vmax.bf16 %v2403_v34, %v1350_v12 }
 0x3c7   :  { %v1365_v17 = vmax.bf16 %v2403_v34, %v1349_v15 }
 0x3c9   :  { %2308 = vmatprep.mubr.bf16.mxu0 %v1365_v17 }
 0x3ca   :  { %2309 = vmatmul.mubr.bf16.gmra.mrb[96].mxu0 %v1366_v21 }
 0x3cf   :  { %v2266_v23 = vpop.f32.mrb[100].mxu1 }
 0x3d0   :  { %v1294_v24 = vpop.f32.mrb[101].mxu1  ;;  %v1303_v29 = vadd.f32 %v2266_v23, %v2966_v27 }
 0x3d1   :  { %v2267_v25 = vpop.f32.mrb[102].mxu1  ;;  %v1295_v32 = vadd.f32 %v2966_v27, %v1294_v24 }
 0x3d2   :  { %v1306_v30 = vadd.f32 %v2267_v25, %v2966_v27  ;;  %v1297_v31 = vpop.f32.mrb[103].mxu1 }
 0x3d3   :  { %v1298_v33 = vadd.f32 %v2966_v27, %v1297_v31 }
 0x3d4   :  { %v1352_v35 = vpack.c.bf16 %v1306_v30, %v1303_v29 }
 0x3d5   :  { %v1351_v26 = vpack.c.bf16 %v1298_v33, %v1295_v32 }
 0x3d6   :  { %v1368_v38 = vmax.bf16 %v2403_v34, %v1352_v35 }
 0x3d7   :  { %v1367_v37 = vmax.bf16 %v2403_v34, %v1351_v26 }
 0x3d9   :  { %2312 = vmatprep.mubr.bf16.mxu0 %v1367_v37 }
 0x3da   :  { %2313 = vmatmul.mubr.bf16.gmra.mrb[100].mxu0 %v1368_v38 }
 0x3df   :  { %v2270_v39 = vpop.f32.mrb[104].mxu1 }
 0x3e0   :  { %v1310_v40 = vpop.f32.mrb[105].mxu1  ;;  %v1319_v42 = vadd.f32 %v2270_v39, %v2966_v27 }
 0x3e1   :  { %v2271_v41 = vpop.f32.mrb[106].mxu1  ;;  %v1311_v46 = vadd.f32 %v2966_v27, %v1310_v40 }
 0x3e2   :  { %v1322_v43 = vadd.f32 %v2271_v41, %v2966_v27  ;;  %v1313_v44 = vpop.f32.mrb[107].mxu1 }
 0x3e3   :  { %v1314_v47 = vadd.f32 %v2966_v27, %v1313_v44 }
 0x3e4   :  { %v1354_v48 = vpack.c.bf16 %v1322_v43, %v1319_v42 }
 0x3e5   :  { %v1353_v50 = vpack.c.bf16 %v1314_v47, %v1311_v46 }
 0x3e6   :  { %v1370_v52 = vmax.bf16 %v2403_v34, %v1354_v48 }
 0x3e7   :  { %v1369_v51 = vmax.bf16 %v2403_v34, %v1353_v50 }
 0x3e9   :  { %2316 = vmatprep.mubr.bf16.mxu0 %v1369_v51 }
 0x3ea   :  { %2317 = vmatmul.mubr.bf16.gmra.mrb[104].mxu0 %v1370_v52 }
 0x3ef   :  { %v2274_v54 = vpop.f32.mrb[108].mxu1 }
 0x3f0   :  { %v1326_v55 = vpop.f32.mrb[109].mxu1  ;;  %v1335_v57 = vadd.f32 %v2274_v54, %v2966_v27 }
 0x3f1   :  { %v2275_v28 = vpop.f32.mrb[110].mxu1  ;;  %v1327_v61 = vadd.f32 %v2966_v27, %v1326_v55 }
 0x3f2   :  { %v1338_v58 = vadd.f32 %v2275_v28, %v2966_v27  ;;  %v1329_v59 = vpop.f32.mrb[111].mxu1 }
 0x3f3   :  { %v1330_v63 = vadd.f32 %v2966_v27, %v1329_v59 }
 0x3f4   :  { %v1356_v1 = vpack.c.bf16 %v1338_v58, %v1335_v57 }
 0x3f5   :  { %v1355_v2 = vpack.c.bf16 %v1330_v63, %v1327_v61 }
 0x3f6   :  { %v1372_v5 = vmax.bf16 %v2403_v34, %v1356_v1 }
 0x3f7   :  { %v1371_v4 = vmax.bf16 %v2403_v34, %v1355_v2 }
 0x3f9   :  { %2320 = vmatprep.mubr.bf16.mxu0 %v1371_v4 }
 0x3fa   :  { %2321 = vmatmul.mubr.bf16.gmra.mrb[108].mxu0 %v1372_v5 }
 0x45d   :  { %v2294_v6 = vpop.f32.mrb[80].mxu0 }
 0x45e   :  { %v1478_v9 = vpop.f32.mrb[81].mxu0  ;;  %v1487_v13 = vadd.f32 %v2294_v6, %v3019_v7 }
 0x45f   :  { %v2295_v10 = vpop.f32.mrb[82].mxu0  ;;  %v1479_v16 = vadd.f32 %v3019_v7, %v1478_v9 }
 0x460   :  { %v1490_v27 = vadd.f32 %v2295_v10, %v3019_v7  ;;  %v1481_v14 = vpop.f32.mrb[83].mxu0 }
 0x461   :  { %v1482_v18 = vadd.f32 %v3019_v7, %v1481_v14 }
 0x462   :  { %v1927_v34 = vpack.c.bf16 %v1490_v27, %v1487_v13 }
 0x463   :  { %v1922_v19 = vpack.c.bf16 %v1482_v18, %v1479_v16 }
 0x464   :  { %1999 = vst [vmem:[%s3112_s11 + $0x8] sm:$0xff] %v1927_v34  }
 0x465   :  { %1923 = vst [vmem:[%s3112_s11] sm:$0xff] %v1922_v19  }
 0x46d   :  { %v2298_v20 = vpop.f32.mrb[84].mxu0 }
 0x46e   :  { %v1494_v36 = vpop.f32.mrb[85].mxu0  ;;  %v1503_v3 = vadd.f32 %v2298_v20, %v3019_v7 }
 0x46f   :  { %v2299_v62 = vpop.f32.mrb[86].mxu0  ;;  %v1495_v49 = vadd.f32 %v3019_v7, %v1494_v36 }
 0x470   :  { %v1506_v11 = vadd.f32 %v2299_v62, %v3019_v7  ;;  %v1497_v22 = vpop.f32.mrb[87].mxu0 }
 0x471   :  { %v1498_v45 = vadd.f32 %v3019_v7, %v1497_v22 }
 0x472   :  { %v1937_v53 = vpack.c.bf16 %v1506_v11, %v1503_v3 }
 0x473   :  { %v1932_v56 = vpack.c.bf16 %v1498_v45, %v1495_v49 }
 0x474   :  { %2001 = vst [vmem:[%s3112_s11 + $0x18] sm:$0xff] %v1937_v53  }
 0x475   :  { %2000 = vst [vmem:[%s3112_s11 + $0x10] sm:$0xff] %v1932_v56  }
 0x47d   :  { %v2302_v60 = vpop.f32.mrb[88].mxu0 }
 0x47e   :  { %v1510_v0 = vpop.f32.mrb[89].mxu0  ;;  %v1519_v12 = vadd.f32 %v2302_v60, %v3019_v7 }
 0x47f   :  { %v2303_v8 = vpop.f32.mrb[90].mxu0  ;;  %v1511_v21 = vadd.f32 %v3019_v7, %v1510_v0 }
 0x480   :  { %v1522_v15 = vadd.f32 %v2303_v8, %v3019_v7  ;;  %v1513_v17 = vpop.f32.mrb[91].mxu0 }
 0x481   :  { %v1514_v23 = vadd.f32 %v3019_v7, %v1513_v17 }
 0x482   :  { %v1947_v24 = vpack.c.bf16 %v1522_v15, %v1519_v12 }
 0x483   :  { %v1942_v25 = vpack.c.bf16 %v1514_v23, %v1511_v21 }
 0x484   :  { %2003 = vst [vmem:[%s3112_s11 + $0x28] sm:$0xff] %v1947_v24  }
 0x485   :  { %2002 = vst [vmem:[%s3112_s11 + $0x20] sm:$0xff] %v1942_v25  }
 0x48d   :  { %v2306_v29 = vpop.f32.mrb[92].mxu0 }
 0x48e   :  { %v1526_v30 = vpop.f32.mrb[93].mxu0  ;;  %v1535_v32 = vadd.f32 %v2306_v29, %v3019_v7 }
 0x48f   :  { %v2307_v31 = vpop.f32.mrb[94].mxu0  ;;  %v1527_v26 = vadd.f32 %v3019_v7, %v1526_v30 }
 0x490   :  { %v1538_v33 = vadd.f32 %v2307_v31, %v3019_v7  ;;  %v1529_v35 = vpop.f32.mrb[95].mxu0 }
 0x491   :  { %v1530_v37 = vadd.f32 %v3019_v7, %v1529_v35 }
 0x492   :  { %v1957_v38 = vpack.c.bf16 %v1538_v33, %v1535_v32 }
 0x493   :  { %v1952_v39 = vpack.c.bf16 %v1530_v37, %v1527_v26 }
 0x494   :  { %2005 = vst [vmem:[%s3112_s11 + $0x38] sm:$0xff] %v1957_v38  }
 0x495   :  { %2004 = vst [vmem:[%s3112_s11 + $0x30] sm:$0xff] %v1952_v39  }
 0x49d   :  { %v2310_v40 = vpop.f32.mrb[96].mxu0 }
 0x49e   :  { %v1542_v41 = vpop.f32.mrb[97].mxu0  ;;  %v1551_v43 = vadd.f32 %v2310_v40, %v3019_v7 }
 0x49f   :  { %v2311_v42 = vpop.f32.mrb[98].mxu0  ;;  %v1543_v47 = vadd.f32 %v3019_v7, %v1542_v41 }
 0x4a0   :  { %v1554_v44 = vadd.f32 %v2311_v42, %v3019_v7  ;;  %v1545_v46 = vpop.f32.mrb[99].mxu0 }
 0x4a1   :  { %v1546_v48 = vadd.f32 %v3019_v7, %v1545_v46 }
 0x4a2   :  { %v1967_v50 = vpack.c.bf16 %v1554_v44, %v1551_v43 }
 0x4a3   :  { %v1962_v51 = vpack.c.bf16 %v1546_v48, %v1543_v47 }
 0x4a4   :  { %2007 = vst [vmem:[%s3112_s11 + $0x48] sm:$0xff] %v1967_v50  }
 0x4a5   :  { %2006 = vst [vmem:[%s3112_s11 + $0x40] sm:$0xff] %v1962_v51  }
 0x4ad   :  { %v2314_v52 = vpop.f32.mrb[100].mxu0 }
 0x4ae   :  { %v1558_v54 = vpop.f32.mrb[101].mxu0  ;;  %v1567_v28 = vadd.f32 %v2314_v52, %v3019_v7 }
 0x4af   :  { %v2315_v55 = vpop.f32.mrb[102].mxu0  ;;  %v1559_v59 = vadd.f32 %v3019_v7, %v1558_v54 }
 0x4b0   :  { %v1570_v57 = vadd.f32 %v2315_v55, %v3019_v7  ;;  %v1561_v58 = vpop.f32.mrb[103].mxu0 }
 0x4b1   :  { %v1562_v61 = vadd.f32 %v3019_v7, %v1561_v58 }
 0x4b2   :  { %v1977_v63 = vpack.c.bf16 %v1570_v57, %v1567_v28 }
 0x4b3   :  { %v1972_v1 = vpack.c.bf16 %v1562_v61, %v1559_v59 }
 0x4b4   :  { %2009 = vst [vmem:[%s3112_s11 + $0x58] sm:$0xff] %v1977_v63  }
 0x4b5   :  { %2008 = vst [vmem:[%s3112_s11 + $0x50] sm:$0xff] %v1972_v1  }
 0x4bd   :  { %v2318_v2 = vpop.f32.mrb[104].mxu0 }
 0x4be   :  { %v1574_v4 = vpop.f32.mrb[105].mxu0  ;;  %v1583_v6 = vadd.f32 %v2318_v2, %v3019_v7 }
 0x4bf   :  { %v2319_v5 = vpop.f32.mrb[106].mxu0  ;;  %v1575_v13 = vadd.f32 %v3019_v7, %v1574_v4 }
 0x4c0   :  { %v1586_v9 = vadd.f32 %v2319_v5, %v3019_v7  ;;  %v1577_v10 = vpop.f32.mrb[107].mxu0 }
 0x4c1   :  { %v1578_v27 = vadd.f32 %v3019_v7, %v1577_v10 }
 0x4c2   :  { %v1987_v14 = vpack.c.bf16 %v1586_v9, %v1583_v6 }
 0x4c3   :  { %v1982_v16 = vpack.c.bf16 %v1578_v27, %v1575_v13 }
 0x4c4   :  { %2011 = vst [vmem:[%s3112_s11 + $0x68] sm:$0xff] %v1987_v14  }
 0x4c5   :  { %2010 = vst [vmem:[%s3112_s11 + $0x60] sm:$0xff] %v1982_v16  }
 0x4cd   :  { %v2322_v18 = vpop.f32.mrb[108].mxu0 }
 0x4ce   :  { %v1590_v34 = vpop.f32.mrb[109].mxu0  ;;  %v1599_v20 = vadd.f32 %v2322_v18, %v3019_v7 }
 0x4cf   :  { %v2323_v19 = vpop.f32.mrb[110].mxu0  ;;  %v1591_v3 = vadd.f32 %v3019_v7, %v1590_v34 }
 0x4d0   :  { %v1602_v36 = vadd.f32 %v2323_v19, %v3019_v7  ;;  %v1593_v62 = vpop.f32.mrb[111].mxu0 }
 0x4d1   :  { %v1594_v11 = vadd.f32 %v3019_v7, %v1593_v62 }
 0x4d2   :  { %v1997_v22 = vpack.c.bf16 %v1602_v36, %v1599_v20 }
 0x4d3   :  { %v1992_v49 = vpack.c.bf16 %v1594_v11, %v1591_v3 }
 0x4d4   :  { %2013 = vst [vmem:[%s3112_s11 + $0x78] sm:$0xff] %v1997_v22  }
 0x4d5   :  { %2012 = vst [vmem:[%s3112_s11 + $0x70] sm:$0xff] %v1992_v49  }

</bundles_post_ra>
